<compile_context>
chip_gen: v7x
topology: tpu7x:2x2x1
jax: 0.10.0
libtpu: 0.0.40
codegen_flags: <defaults>
</compile_context>

<pallas_src>
import functools

import jax
import jax.numpy as jnp
from jax.experimental import pallas as pl
from jax.experimental.pallas import tpu as pltpu

K = 32          # conv kernel size
STRIDE = 16
PAD = 16
TILE = STRIDE   # 16x16 input tiles
KK_Q = TILE * TILE   # 256 weights per quadrant
WROWS = 8            # pad the single output channel to 8 sublanes for the MXU

# Structural assumptions that make every 32x32 patch an exact 2x2 group of
# adjacent 16x16 tiles of the padded input (review correctness item).
assert K == 2 * STRIDE and PAD == STRIDE


def _round_up(x, m):
    return (x + m - 1) // m * m


def conv_tanh_kernel(rows_per_step, b_ref, w_ref, a_ref, alast_ref, o_ref):
    """One band of `rows_per_step` output rows for one image.

    b_ref:     [1]               f32  (SMEM) bias
    w_ref:     [4, 8, 256]       bf16 weight quadrants (q = di*2 + dj), row 0 real
    a_ref:     [1, R, 256, Wt]   bf16 tile rows [band*R, band*R + R)
    alast_ref: [1, 1, 256, Wt]   bf16 tile row  band*R + R   (band boundary)
    o_ref:     [1, R, Wt]        f32  output rows of this band
    """
    bias = b_ref[0]
    w0 = w_ref[0]    # (di=0, dj=0)
    w1 = w_ref[1]    # (di=0, dj=1)
    w2 = w_ref[2]    # (di=1, dj=0)
    w3 = w_ref[3]    # (di=1, dj=1)

    for r in range(rows_per_step):                      # static unroll
        a0 = a_ref[0, r]                                # tile row oh      [256, Wt]
        a1 = (a_ref[0, r + 1] if r + 1 < rows_per_step
              else alast_ref[0, 0])                     # tile row oh + 1  [256, Wt]

        # dj = 0 quadrants: contribution to out[ow] comes from tile column ow.
        acc0 = jnp.dot(w0, a0, preferred_element_type=jnp.float32)
        acc0 = acc0 + jnp.dot(w2, a1, preferred_element_type=jnp.float32)
        # dj = 1 quadrants: contribution to out[ow] comes from tile column ow+1.
        acc1 = jnp.dot(w1, a0, preferred_element_type=jnp.float32)
        acc1 = acc1 + jnp.dot(w3, a1, preferred_element_type=jnp.float32)

        # Align the dj = 1 contribution (column ow+1 -> ow).  The wrapped-around
        # last column is garbage and gets sliced off in the wrapper.
        row = acc0[0:1, :] + jnp.roll(acc1[0:1, :], shift=-1, axis=1)
        o_ref[0, r:r + 1, :] = jnp.tanh(row + bias)


def model_tanh_forward(x, weight, bias, *, rows_per_step=8):
    """ModelTanh forward: tanh(conv2d(x)); x is NCHW [N, 1, H, W]."""
    N, C, H, W = x.shape
    assert C == 1
    OH = (H + 2 * PAD - K) // STRIDE + 1
    OW = (W + 2 * PAD - K) // STRIDE + 1

    # Band size along output rows; the out block's second-to-last dim must be a
    # multiple of 8 or the full dim, so use R = 8 (padding OH up) or R = OH.
    R = rows_per_step if OH >= rows_per_step else OH
    OHp = _round_up(OH, R)

    # Padded image sized so tile rows 0..OHp and tile cols 0..OW all exist.
    Ht = OHp + 1
    Wt = OW + 1
    Hp = Ht * TILE
    Wp = Wt * TILE
    x_pad = jnp.pad(
        x[:, 0].astype(jnp.bfloat16),
        ((0, 0), (PAD, Hp - H - PAD), (PAD, Wp - W - PAD)))

    # Tile layout: T[n, i, dh*16+dw, j] = x_pad[n, i*16+dh, j*16+dw].
    # One layout copy (~input bytes); the kernel builds patches straight from it.
    tiles = x_pad.reshape(N, Ht, TILE, Wt, TILE)
    t = tiles.transpose(0, 1, 2, 4, 3).reshape(N, Ht, KK_Q, Wt)

    # Weight quadrants: wq[di*2+dj, 0, dh*16+dw] = weight[0,0, di*16+dh, dj*16+dw].
    wq = weight.reshape(2, TILE, 2, TILE).transpose(0, 2, 1, 3)
    wq = wq.reshape(4, 1, KK_Q).astype(jnp.bfloat16)
    w_mat = jnp.pad(wq, ((0, 0), (0, WROWS - 1), (0, 0)))   # rows 1..7 zero
    b = bias.reshape(1).astype(jnp.float32)

    grid = (N, OHp // R)
    cost = pl.CostEstimate(
        flops=2 * 4 * WROWS * KK_Q * Wt * OHp * N,
        transcendentals=N * OHp * Wt,
        bytes_accessed=int(t.size * 2 * (R + 1) / R) + w_mat.size * 2
        + N * OHp * Wt * 4,
    )

    out = pl.pallas_call(
        functools.partial(conv_tanh_kernel, R),
        out_shape=jax.ShapeDtypeStruct((N, OHp, Wt), jnp.float32),
        grid_spec=pltpu.PrefetchScalarGridSpec(
            num_scalar_prefetch=0,
            grid=grid,
            in_specs=[
                pl.BlockSpec(memory_space=pltpu.MemorySpace.SMEM),          # bias
                pl.BlockSpec((4, WROWS, KK_Q), lambda n, g: (0, 0, 0)),     # weights (resident)
                pl.BlockSpec((1, R, KK_Q, Wt), lambda n, g: (n, g, 0, 0)),  # band tile rows
                pl.BlockSpec((1, 1, KK_Q, Wt),
                             lambda n, g: (n, g * R + R, 0, 0)),            # boundary tile row
            ],
            out_specs=pl.BlockSpec((1, R, Wt), lambda n, g: (n, g, 0)),
        ),
        compiler_params=pltpu.CompilerParams(
            dimension_semantics=("parallel", "parallel")),
        cost_estimate=cost,
    )(b, w_mat, t, t)

    # Drop the padded output rows and the wrap-around output column.
    return out[:, :OH, :OW].reshape(N, 1, OH, OW)


if __name__ == "__main__":
    key = jax.random.PRNGKey(0)
    kx, kw, kb = jax.random.split(key, 3)

    # Small input consistent with the module: single channel, 64x64 spatial.
    N, H, W = 2, 64, 64
    x = jax.random.normal(kx, (N, 1, H, W), dtype=jnp.float32)

    # Deterministic parameter init (PyTorch Conv2d default: U(-1/sqrt(fan_in), +)).
    fan_in = 1 * K * K
    bound = 1.0 / (fan_in ** 0.5)
    weight = jax.random.uniform(kw, (1, 1, K, K), jnp.float32, -bound, bound)
    bias = jax.random.uniform(kb, (1,), jnp.float32, -bound, bound)

    fwd = jax.jit(model_tanh_forward)
    y = jax.block_until_ready(fwd(x, weight, bias))

    # Reference check with plain JAX conv (NCHW / OIHW).
    ref = jax.lax.conv_general_dilated(
        x, weight, window_strides=(STRIDE, STRIDE),
        padding=((PAD, PAD), (PAD, PAD)),
        dimension_numbers=("NCHW", "OIHW", "NCHW"))
    ref = jnp.tanh(ref + bias.reshape(1, 1, 1, 1))
    assert y.shape == ref.shape == (N, 1, H // STRIDE + 1, W // STRIDE + 1)
    assert float(jnp.max(jnp.abs(y - ref))) < 2e-2

    print("KERNEL_OK")
</pallas_src>

<mosaic_0001>
module attributes {stable_mosaic.version = 11 : i64} {
  func.func @conv_tanh_kernel(%arg0: i32, %arg1: i32, %arg2: memref<1xf32, #tpu.memory_space<smem>>, %arg3: memref<4x8x256xbf16, #tpu.memory_space<vmem>>, %arg4: memref<1x5x256x6xbf16, #tpu.memory_space<vmem>>, %arg5: memref<1x1x256x6xbf16, #tpu.memory_space<vmem>>, %arg6: memref<1x5x6xf32, #tpu.memory_space<vmem>>) attributes {dimension_semantics = [#tpu.dimension_semantics<parallel>, #tpu.dimension_semantics<parallel>], iteration_bounds = array<i64: 2, 1>, scalar_prefetch = 0 : i64, scratch_operands = 0 : i64, tpu.core_type = #tpu.core_type<tc>, window_params = [{transform_indices = @transform_0, window_bounds = array<i64: 1>}, {pipeline_mode = #tpu.pipeline_mode<synchronous>, transform_indices = @transform_1, window_bounds = array<i64: 4, 8, 256>}, {transform_indices = @transform_2, window_bounds = array<i64: 1, 5, 256, 6>}, {transform_indices = @transform_3, window_bounds = array<i64: 1, 1, 256, 6>}, {transform_indices = @transform_4, window_bounds = array<i64: 1, 5, 6>}]} {
    %c0 = arith.constant 0 : index
    %0 = memref.load %arg2[%c0] : memref<1xf32, #tpu.memory_space<smem>>
    %c0_0 = arith.constant 0 : index
    %c0_1 = arith.constant 0 : index
    %c0_2 = arith.constant 0 : index
    %1 = vector.load %arg3[%c0_0, %c0_1, %c0_2] : memref<4x8x256xbf16, #tpu.memory_space<vmem>>, vector<1x8x256xbf16>
    %2 = vector.shape_cast %1 : vector<1x8x256xbf16> to vector<8x256xbf16>
    %c1 = arith.constant 1 : index
    %c0_3 = arith.constant 0 : index
    %c0_4 = arith.constant 0 : index
    %3 = vector.load %arg3[%c1, %c0_3, %c0_4] : memref<4x8x256xbf16, #tpu.memory_space<vmem>>, vector<1x8x256xbf16>
    %4 = vector.shape_cast %3 : vector<1x8x256xbf16> to vector<8x256xbf16>
    %c2 = arith.constant 2 : index
    %c0_5 = arith.constant 0 : index
    %c0_6 = arith.constant 0 : index
    %5 = vector.load %arg3[%c2, %c0_5, %c0_6] : memref<4x8x256xbf16, #tpu.memory_space<vmem>>, vector<1x8x256xbf16>
    %6 = vector.shape_cast %5 : vector<1x8x256xbf16> to vector<8x256xbf16>
    %c3 = arith.constant 3 : index
    %c0_7 = arith.constant 0 : index
    %c0_8 = arith.constant 0 : index
    %7 = vector.load %arg3[%c3, %c0_7, %c0_8] : memref<4x8x256xbf16, #tpu.memory_space<vmem>>, vector<1x8x256xbf16>
    %8 = vector.shape_cast %7 : vector<1x8x256xbf16> to vector<8x256xbf16>
    %c0_9 = arith.constant 0 : index
    %c0_10 = arith.constant 0 : index
    %c0_11 = arith.constant 0 : index
    %c0_12 = arith.constant 0 : index
    %9 = vector.load %arg4[%c0_9, %c0_10, %c0_11, %c0_12] : memref<1x5x256x6xbf16, #tpu.memory_space<vmem>>, vector<1x1x256x6xbf16>
    %10 = vector.shape_cast %9 : vector<1x1x256x6xbf16> to vector<256x6xbf16>
    %c0_13 = arith.constant 0 : index
    %c1_14 = arith.constant 1 : index
    %c0_15 = arith.constant 0 : index
    %c0_16 = arith.constant 0 : index
    %11 = vector.load %arg4[%c0_13, %c1_14, %c0_15, %c0_16] : memref<1x5x256x6xbf16, #tpu.memory_space<vmem>>, vector<1x1x256x6xbf16>
    %12 = vector.shape_cast %11 : vector<1x1x256x6xbf16> to vector<256x6xbf16>
    %cst = arith.constant dense<0.000000e+00> : vector<8x6xf32>
    %13 = tpu.matmul %2, %10, %cst {dimension_numbers = #tpu.dot_dimension_numbers<[1], [0], [0], [1], [0, 0, 1, 1], [], []>} : vector<8x256xbf16>, vector<256x6xbf16>, vector<8x6xf32> -> vector<8x6xf32>
    %cst_17 = arith.constant dense<0.000000e+00> : vector<8x6xf32>
    %14 = tpu.matmul %6, %12, %cst_17 {dimension_numbers = #tpu.dot_dimension_numbers<[1], [0], [0], [1], [0, 0, 1, 1], [], []>} : vector<8x256xbf16>, vector<256x6xbf16>, vector<8x6xf32> -> vector<8x6xf32>
    %15 = arith.addf %13, %14 : vector<8x6xf32>
    %cst_18 = arith.constant dense<0.000000e+00> : vector<8x6xf32>
    %16 = tpu.matmul %4, %10, %cst_18 {dimension_numbers = #tpu.dot_dimension_numbers<[1], [0], [0], [1], [0, 0, 1, 1], [], []>} : vector<8x256xbf16>, vector<256x6xbf16>, vector<8x6xf32> -> vector<8x6xf32>
    %cst_19 = arith.constant dense<0.000000e+00> : vector<8x6xf32>
    %17 = tpu.matmul %8, %12, %cst_19 {dimension_numbers = #tpu.dot_dimension_numbers<[1], [0], [0], [1], [0, 0, 1, 1], [], []>} : vector<8x256xbf16>, vector<256x6xbf16>, vector<8x6xf32> -> vector<8x6xf32>
    %18 = arith.addf %16, %17 : vector<8x6xf32>
    %19 = vector.extract_strided_slice %15 {offsets = [0, 0], sizes = [1, 6], strides = [1, 1]} : vector<8x6xf32> to vector<1x6xf32>
    %20 = vector.extract_strided_slice %18 {offsets = [0, 0], sizes = [1, 6], strides = [1, 1]} : vector<8x6xf32> to vector<1x6xf32>
    %21 = vector.extract_strided_slice %20 {offsets = [0, 1], sizes = [1, 5], strides = [1, 1]} : vector<1x6xf32> to vector<1x5xf32>
    %22 = vector.extract_strided_slice %20 {offsets = [0, 0], sizes = [1, 1], strides = [1, 1]} : vector<1x6xf32> to vector<1x1xf32>
    %23 = tpu.concatenate %21, %22 in 1 : vector<1x5xf32>, vector<1x1xf32> -> vector<1x6xf32>
    %24 = arith.addf %19, %23 : vector<1x6xf32>
    %25 = vector.broadcast %0 : f32 to vector<1x6xf32>
    %26 = arith.addf %24, %25 : vector<1x6xf32>
    %27 = math.tanh %26 : vector<1x6xf32>
    %c0_20 = arith.constant 0 : index
    %c0_21 = arith.constant 0 : index
    %c0_22 = arith.constant 0 : index
    %28 = vector.load %arg6[%c0_20, %c0_21, %c0_22] : memref<1x5x6xf32, #tpu.memory_space<vmem>>, vector<1x1x6xf32>
    %29 = vector.shape_cast %28 : vector<1x1x6xf32> to vector<1x6xf32>
    %30 = vector.shape_cast %27 : vector<1x6xf32> to vector<1x1x6xf32>
    tpu.vector_store %arg6[%c0_20, %c0_21, %c0_22], %30 {strides = array<i32>} : memref<1x5x6xf32, #tpu.memory_space<vmem>>, vector<1x1x6xf32>,
    %c0_23 = arith.constant 0 : index
    %c1_24 = arith.constant 1 : index
    %c0_25 = arith.constant 0 : index
    %c0_26 = arith.constant 0 : index
    %31 = vector.load %arg4[%c0_23, %c1_24, %c0_25, %c0_26] : memref<1x5x256x6xbf16, #tpu.memory_space<vmem>>, vector<1x1x256x6xbf16>
    %32 = vector.shape_cast %31 : vector<1x1x256x6xbf16> to vector<256x6xbf16>
    %c0_27 = arith.constant 0 : index
    %c2_28 = arith.constant 2 : index
    %c0_29 = arith.constant 0 : index
    %c0_30 = arith.constant 0 : index
    %33 = vector.load %arg4[%c0_27, %c2_28, %c0_29, %c0_30] : memref<1x5x256x6xbf16, #tpu.memory_space<vmem>>, vector<1x1x256x6xbf16>
    %34 = vector.shape_cast %33 : vector<1x1x256x6xbf16> to vector<256x6xbf16>
    %cst_31 = arith.constant dense<0.000000e+00> : vector<8x6xf32>
    %35 = tpu.matmul %2, %32, %cst_31 {dimension_numbers = #tpu.dot_dimension_numbers<[1], [0], [0], [1], [0, 0, 1, 1], [], []>} : vector<8x256xbf16>, vector<256x6xbf16>, vector<8x6xf32> -> vector<8x6xf32>
    %cst_32 = arith.constant dense<0.000000e+00> : vector<8x6xf32>
    %36 = tpu.matmul %6, %34, %cst_32 {dimension_numbers = #tpu.dot_dimension_numbers<[1], [0], [0], [1], [0, 0, 1, 1], [], []>} : vector<8x256xbf16>, vector<256x6xbf16>, vector<8x6xf32> -> vector<8x6xf32>
    %37 = arith.addf %35, %36 : vector<8x6xf32>
    %cst_33 = arith.constant dense<0.000000e+00> : vector<8x6xf32>
    %38 = tpu.matmul %4, %32, %cst_33 {dimension_numbers = #tpu.dot_dimension_numbers<[1], [0], [0], [1], [0, 0, 1, 1], [], []>} : vector<8x256xbf16>, vector<256x6xbf16>, vector<8x6xf32> -> vector<8x6xf32>
    %cst_34 = arith.constant dense<0.000000e+00> : vector<8x6xf32>
    %39 = tpu.matmul %8, %34, %cst_34 {dimension_numbers = #tpu.dot_dimension_numbers<[1], [0], [0], [1], [0, 0, 1, 1], [], []>} : vector<8x256xbf16>, vector<256x6xbf16>, vector<8x6xf32> -> vector<8x6xf32>
    %40 = arith.addf %38, %39 : vector<8x6xf32>
    %41 = vector.extract_strided_slice %37 {offsets = [0, 0], sizes = [1, 6], strides = [1, 1]} : vector<8x6xf32> to vector<1x6xf32>
    %42 = vector.extract_strided_slice %40 {offsets = [0, 0], sizes = [1, 6], strides = [1, 1]} : vector<8x6xf32> to vector<1x6xf32>
    %43 = vector.extract_strided_slice %42 {offsets = [0, 1], sizes = [1, 5], strides = [1, 1]} : vector<1x6xf32> to vector<1x5xf32>
    %44 = vector.extract_strided_slice %42 {offsets = [0, 0], sizes = [1, 1], strides = [1, 1]} : vector<1x6xf32> to vector<1x1xf32>
    %45 = tpu.concatenate %43, %44 in 1 : vector<1x5xf32>, vector<1x1xf32> -> vector<1x6xf32>
    %46 = arith.addf %41, %45 : vector<1x6xf32>
    %47 = vector.broadcast %0 : f32 to vector<1x6xf32>
    %48 = arith.addf %46, %47 : vector<1x6xf32>
    %49 = math.tanh %48 : vector<1x6xf32>
    %c0_35 = arith.constant 0 : index
    %c1_36 = arith.constant 1 : index
    %c0_37 = arith.constant 0 : index
    %50 = vector.load %arg6[%c0_35, %c1_36, %c0_37] : memref<1x5x6xf32, #tpu.memory_space<vmem>>, vector<1x1x6xf32>
    %51 = vector.shape_cast %50 : vector<1x1x6xf32> to vector<1x6xf32>
    %52 = vector.shape_cast %49 : vector<1x6xf32> to vector<1x1x6xf32>
    tpu.vector_store %arg6[%c0_35, %c1_36, %c0_37], %52 {strides = array<i32>} : memref<1x5x6xf32, #tpu.memory_space<vmem>>, vector<1x1x6xf32>,
    %c0_38 = arith.constant 0 : index
    %c2_39 = arith.constant 2 : index
    %c0_40 = arith.constant 0 : index
    %c0_41 = arith.constant 0 : index
    %53 = vector.load %arg4[%c0_38, %c2_39, %c0_40, %c0_41] : memref<1x5x256x6xbf16, #tpu.memory_space<vmem>>, vector<1x1x256x6xbf16>
    %54 = vector.shape_cast %53 : vector<1x1x256x6xbf16> to vector<256x6xbf16>
    %c0_42 = arith.constant 0 : index
    %c3_43 = arith.constant 3 : index
    %c0_44 = arith.constant 0 : index
    %c0_45 = arith.constant 0 : index
    %55 = vector.load %arg4[%c0_42, %c3_43, %c0_44, %c0_45] : memref<1x5x256x6xbf16, #tpu.memory_space<vmem>>, vector<1x1x256x6xbf16>
    %56 = vector.shape_cast %55 : vector<1x1x256x6xbf16> to vector<256x6xbf16>
    %cst_46 = arith.constant dense<0.000000e+00> : vector<8x6xf32>
    %57 = tpu.matmul %2, %54, %cst_46 {dimension_numbers = #tpu.dot_dimension_numbers<[1], [0], [0], [1], [0, 0, 1, 1], [], []>} : vector<8x256xbf16>, vector<256x6xbf16>, vector<8x6xf32> -> vector<8x6xf32>
    %cst_47 = arith.constant dense<0.000000e+00> : vector<8x6xf32>
    %58 = tpu.matmul %6, %56, %cst_47 {dimension_numbers = #tpu.dot_dimension_numbers<[1], [0], [0], [1], [0, 0, 1, 1], [], []>} : vector<8x256xbf16>, vector<256x6xbf16>, vector<8x6xf32> -> vector<8x6xf32>
    %59 = arith.addf %57, %58 : vector<8x6xf32>
    %cst_48 = arith.constant dense<0.000000e+00> : vector<8x6xf32>
    %60 = tpu.matmul %4, %54, %cst_48 {dimension_numbers = #tpu.dot_dimension_numbers<[1], [0], [0], [1], [0, 0, 1, 1], [], []>} : vector<8x256xbf16>, vector<256x6xbf16>, vector<8x6xf32> -> vector<8x6xf32>
    %cst_49 = arith.constant dense<0.000000e+00> : vector<8x6xf32>
    %61 = tpu.matmul %8, %56, %cst_49 {dimension_numbers = #tpu.dot_dimension_numbers<[1], [0], [0], [1], [0, 0, 1, 1], [], []>} : vector<8x256xbf16>, vector<256x6xbf16>, vector<8x6xf32> -> vector<8x6xf32>
    %62 = arith.addf %60, %61 : vector<8x6xf32>
    %63 = vector.extract_strided_slice %59 {offsets = [0, 0], sizes = [1, 6], strides = [1, 1]} : vector<8x6xf32> to vector<1x6xf32>
    %64 = vector.extract_strided_slice %62 {offsets = [0, 0], sizes = [1, 6], strides = [1, 1]} : vector<8x6xf32> to vector<1x6xf32>
    %65 = vector.extract_strided_slice %64 {offsets = [0, 1], sizes = [1, 5], strides = [1, 1]} : vector<1x6xf32> to vector<1x5xf32>
    %66 = vector.extract_strided_slice %64 {offsets = [0, 0], sizes = [1, 1], strides = [1, 1]} : vector<1x6xf32> to vector<1x1xf32>
    %67 = tpu.concatenate %65, %66 in 1 : vector<1x5xf32>, vector<1x1xf32> -> vector<1x6xf32>
    %68 = arith.addf %63, %67 : vector<1x6xf32>
    %69 = vector.broadcast %0 : f32 to vector<1x6xf32>
    %70 = arith.addf %68, %69 : vector<1x6xf32>
    %71 = math.tanh %70 : vector<1x6xf32>
    %c0_50 = arith.constant 0 : index
    %c2_51 = arith.constant 2 : index
    %c0_52 = arith.constant 0 : index
    %72 = vector.load %arg6[%c0_50, %c2_51, %c0_52] : memref<1x5x6xf32, #tpu.memory_space<vmem>>, vector<1x1x6xf32>
    %73 = vector.shape_cast %72 : vector<1x1x6xf32> to vector<1x6xf32>
    %74 = vector.shape_cast %71 : vector<1x6xf32> to vector<1x1x6xf32>
    tpu.vector_store %arg6[%c0_50, %c2_51, %c0_52], %74 {strides = array<i32>} : memref<1x5x6xf32, #tpu.memory_space<vmem>>, vector<1x1x6xf32>,
    %c0_53 = arith.constant 0 : index
    %c3_54 = arith.constant 3 : index
    %c0_55 = arith.constant 0 : index
    %c0_56 = arith.constant 0 : index
    %75 = vector.load %arg4[%c0_53, %c3_54, %c0_55, %c0_56] : memref<1x5x256x6xbf16, #tpu.memory_space<vmem>>, vector<1x1x256x6xbf16>
    %76 = vector.shape_cast %75 : vector<1x1x256x6xbf16> to vector<256x6xbf16>
    %c0_57 = arith.constant 0 : index
    %c4 = arith.constant 4 : index
    %c0_58 = arith.constant 0 : index
    %c0_59 = arith.constant 0 : index
    %77 = vector.load %arg4[%c0_57, %c4, %c0_58, %c0_59] : memref<1x5x256x6xbf16, #tpu.memory_space<vmem>>, vector<1x1x256x6xbf16>
    %78 = vector.shape_cast %77 : vector<1x1x256x6xbf16> to vector<256x6xbf16>
    %cst_60 = arith.constant dense<0.000000e+00> : vector<8x6xf32>
    %79 = tpu.matmul %2, %76, %cst_60 {dimension_numbers = #tpu.dot_dimension_numbers<[1], [0], [0], [1], [0, 0, 1, 1], [], []>} : vector<8x256xbf16>, vector<256x6xbf16>, vector<8x6xf32> -> vector<8x6xf32>
    %cst_61 = arith.constant dense<0.000000e+00> : vector<8x6xf32>
    %80 = tpu.matmul %6, %78, %cst_61 {dimension_numbers = #tpu.dot_dimension_numbers<[1], [0], [0], [1], [0, 0, 1, 1], [], []>} : vector<8x256xbf16>, vector<256x6xbf16>, vector<8x6xf32> -> vector<8x6xf32>
    %81 = arith.addf %79, %80 : vector<8x6xf32>
    %cst_62 = arith.constant dense<0.000000e+00> : vector<8x6xf32>
    %82 = tpu.matmul %4, %76, %cst_62 {dimension_numbers = #tpu.dot_dimension_numbers<[1], [0], [0], [1], [0, 0, 1, 1], [], []>} : vector<8x256xbf16>, vector<256x6xbf16>, vector<8x6xf32> -> vector<8x6xf32>
    %cst_63 = arith.constant dense<0.000000e+00> : vector<8x6xf32>
    %83 = tpu.matmul %8, %78, %cst_63 {dimension_numbers = #tpu.dot_dimension_numbers<[1], [0], [0], [1], [0, 0, 1, 1], [], []>} : vector<8x256xbf16>, vector<256x6xbf16>, vector<8x6xf32> -> vector<8x6xf32>
    %84 = arith.addf %82, %83 : vector<8x6xf32>
    %85 = vector.extract_strided_slice %81 {offsets = [0, 0], sizes = [1, 6], strides = [1, 1]} : vector<8x6xf32> to vector<1x6xf32>
    %86 = vector.extract_strided_slice %84 {offsets = [0, 0], sizes = [1, 6], strides = [1, 1]} : vector<8x6xf32> to vector<1x6xf32>
    %87 = vector.extract_strided_slice %86 {offsets = [0, 1], sizes = [1, 5], strides = [1, 1]} : vector<1x6xf32> to vector<1x5xf32>
    %88 = vector.extract_strided_slice %86 {offsets = [0, 0], sizes = [1, 1], strides = [1, 1]} : vector<1x6xf32> to vector<1x1xf32>
    %89 = tpu.concatenate %87, %88 in 1 : vector<1x5xf32>, vector<1x1xf32> -> vector<1x6xf32>
    %90 = arith.addf %85, %89 : vector<1x6xf32>
    %91 = vector.broadcast %0 : f32 to vector<1x6xf32>
    %92 = arith.addf %90, %91 : vector<1x6xf32>
    %93 = math.tanh %92 : vector<1x6xf32>
    %c0_64 = arith.constant 0 : index
    %c3_65 = arith.constant 3 : index
    %c0_66 = arith.constant 0 : index
    %94 = vector.load %arg6[%c0_64, %c3_65, %c0_66] : memref<1x5x6xf32, #tpu.memory_space<vmem>>, vector<1x1x6xf32>
    %95 = vector.shape_cast %94 : vector<1x1x6xf32> to vector<1x6xf32>
    %96 = vector.shape_cast %93 : vector<1x6xf32> to vector<1x1x6xf32>
    tpu.vector_store %arg6[%c0_64, %c3_65, %c0_66], %96 {strides = array<i32>} : memref<1x5x6xf32, #tpu.memory_space<vmem>>, vector<1x1x6xf32>,
    %c0_67 = arith.constant 0 : index
    %c4_68 = arith.constant 4 : index
    %c0_69 = arith.constant 0 : index
    %c0_70 = arith.constant 0 : index
    %97 = vector.load %arg4[%c0_67, %c4_68, %c0_69, %c0_70] : memref<1x5x256x6xbf16, #tpu.memory_space<vmem>>, vector<1x1x256x6xbf16>
    %98 = vector.shape_cast %97 : vector<1x1x256x6xbf16> to vector<256x6xbf16>
    %c0_71 = arith.constant 0 : index
    %c0_72 = arith.constant 0 : index
    %c0_73 = arith.constant 0 : index
    %c0_74 = arith.constant 0 : index
    %99 = vector.load %arg5[%c0_71, %c0_72, %c0_73, %c0_74] : memref<1x1x256x6xbf16, #tpu.memory_space<vmem>>, vector<1x1x256x6xbf16>
    %100 = vector.shape_cast %99 : vector<1x1x256x6xbf16> to vector<256x6xbf16>
    %cst_75 = arith.constant dense<0.000000e+00> : vector<8x6xf32>
    %101 = tpu.matmul %2, %98, %cst_75 {dimension_numbers = #tpu.dot_dimension_numbers<[1], [0], [0], [1], [0, 0, 1, 1], [], []>} : vector<8x256xbf16>, vector<256x6xbf16>, vector<8x6xf32> -> vector<8x6xf32>
    %cst_76 = arith.constant dense<0.000000e+00> : vector<8x6xf32>
    %102 = tpu.matmul %6, %100, %cst_76 {dimension_numbers = #tpu.dot_dimension_numbers<[1], [0], [0], [1], [0, 0, 1, 1], [], []>} : vector<8x256xbf16>, vector<256x6xbf16>, vector<8x6xf32> -> vector<8x6xf32>
    %103 = arith.addf %101, %102 : vector<8x6xf32>
    %cst_77 = arith.constant dense<0.000000e+00> : vector<8x6xf32>
    %104 = tpu.matmul %4, %98, %cst_77 {dimension_numbers = #tpu.dot_dimension_numbers<[1], [0], [0], [1], [0, 0, 1, 1], [], []>} : vector<8x256xbf16>, vector<256x6xbf16>, vector<8x6xf32> -> vector<8x6xf32>
    %cst_78 = arith.constant dense<0.000000e+00> : vector<8x6xf32>
    %105 = tpu.matmul %8, %100, %cst_78 {dimension_numbers = #tpu.dot_dimension_numbers<[1], [0], [0], [1], [0, 0, 1, 1], [], []>} : vector<8x256xbf16>, vector<256x6xbf16>, vector<8x6xf32> -> vector<8x6xf32>
    %106 = arith.addf %104, %105 : vector<8x6xf32>
    %107 = vector.extract_strided_slice %103 {offsets = [0, 0], sizes = [1, 6], strides = [1, 1]} : vector<8x6xf32> to vector<1x6xf32>
    %108 = vector.extract_strided_slice %106 {offsets = [0, 0], sizes = [1, 6], strides = [1, 1]} : vector<8x6xf32> to vector<1x6xf32>
    %109 = vector.extract_strided_slice %108 {offsets = [0, 1], sizes = [1, 5], strides = [1, 1]} : vector<1x6xf32> to vector<1x5xf32>
    %110 = vector.extract_strided_slice %108 {offsets = [0, 0], sizes = [1, 1], strides = [1, 1]} : vector<1x6xf32> to vector<1x1xf32>
    %111 = tpu.concatenate %109, %110 in 1 : vector<1x5xf32>, vector<1x1xf32> -> vector<1x6xf32>
    %112 = arith.addf %107, %111 : vector<1x6xf32>
    %113 = vector.broadcast %0 : f32 to vector<1x6xf32>
    %114 = arith.addf %112, %113 : vector<1x6xf32>
    %115 = math.tanh %114 : vector<1x6xf32>
    %c0_79 = arith.constant 0 : index
    %c4_80 = arith.constant 4 : index
    %c0_81 = arith.constant 0 : index
    %116 = vector.load %arg6[%c0_79, %c4_80, %c0_81] : memref<1x5x6xf32, #tpu.memory_space<vmem>>, vector<1x1x6xf32>
    %117 = vector.shape_cast %116 : vector<1x1x6xf32> to vector<1x6xf32>
    %118 = vector.shape_cast %115 : vector<1x6xf32> to vector<1x1x6xf32>
    tpu.vector_store %arg6[%c0_79, %c4_80, %c0_81], %118 {strides = array<i32>} : memref<1x5x6xf32, #tpu.memory_space<vmem>>, vector<1x1x6xf32>,
    return
  }
  func.func @transform_0(%arg0: i32, %arg1: i32) -> i32 {
    %c0_i32 = arith.constant 0 : i32
    %c0_i32_0 = arith.constant 0 : i32
    return %c0_i32 : i32
  }
  func.func @transform_1(%arg0: i32, %arg1: i32) -> (i32, i32, i32) {
    %c0_i32 = arith.constant 0 : i32
    %c0_i32_0 = arith.constant 0 : i32
    %c0_i32_1 = arith.constant 0 : i32
    %c0_i32_2 = arith.constant 0 : i32
    return %c0_i32, %c0_i32_0, %c0_i32_1 : i32, i32, i32
  }
  func.func @transform_2(%arg0: i32, %arg1: i32) -> (i32, i32, i32, i32) {
    %c0_i32 = arith.constant 0 : i32
    %c0_i32_0 = arith.constant 0 : i32
    %c0_i32_1 = arith.constant 0 : i32
    return %arg0, %arg1, %c0_i32, %c0_i32_0 : i32, i32, i32, i32
  }
  func.func @transform_3(%arg0: i32, %arg1: i32) -> (i32, i32, i32, i32) {
    %c5_i32 = arith.constant 5 : i32
    %0 = arith.muli %arg1, %c5_i32 : i32
    %c5_i32_0 = arith.constant 5 : i32
    %1 = arith.addi %0, %c5_i32_0 : i32
    %c0_i32 = arith.constant 0 : i32
    %c0_i32_1 = arith.constant 0 : i32
    %c0_i32_2 = arith.constant 0 : i32
    return %arg0, %1, %c0_i32, %c0_i32_1 : i32, i32, i32, i32
  }
  func.func @transform_4(%arg0: i32, %arg1: i32) -> (i32, i32, i32) {
    %c0_i32 = arith.constant 0 : i32
    %c0_i32_0 = arith.constant 0 : i32
    return %arg0, %arg1, %c0_i32 : i32, i32, i32
  }
}

</mosaic_0001>

<bundles_post_ra>
// kernel: model_tanh_forward.1
= control target key start
LH: loop header
LB: loop body
LE: loop exit
PB: predicated region body
PF: predicated region fallthrough
CT: control target
= control target key end

     0   :  { %s3734_s17 = smov 0   ;;  %s3736_s18 = smov 0   ;;  %s4345_s0 = inlined_call_operand.<no memory space> [shape: f32[1], index: 0, kind: input, shape index: {}]   ;;  %s4346_s1 = inlined_call_operand.vmem [shape: bf16[4,8,256], index: 1, kind: input, shape index: {}]   ;;  %s4347_s2 = inlined_call_operand.vmem [shape: bf16[2,6,256,6], index: 2, kind: input, shape index: {}, may-alias: {2,3}]   ;;  %s4348_s3 = inlined_call_operand.vmem [shape: bf16[2,6,256,6], index: 3, kind: input, shape index: {}, may-alias: {2,3}]   ;;  %s4349_s4 = inlined_call_operand.vmem [shape: f32[2,5,6], index: 4, kind: output, shape index: {}]  }
   0x1   :  { %9 = sst [smem:[#allocation2]] %s4345_s0  ;;  %s3738_s19 = smov 0  }
   0x2 LB: > { %s27_s0 = sadd.s32 1, %s3698_s18  ;;  %p2598_p0 = scmp.ge.s32.totalorder %s3702_s19, 1  ;;  %s3702_s19 = sphi %s3738_s19, %s15_s19   ;;  %s3698_s18 = sphi %s3736_s18, %s4351_s18   ;;  %s3694_s17 = sphi %s3734_s17, %s4350_s17  }
   0x3   : > { %p29_p1 = scmp.ge.s32.totalorder %s27_s0, 2  ;;  %p219_p2 = scmp.lt.s32.totalorder %s3702_s19, 3 }
   0x5   : > { %s4353_s0 = smov (%p29_p1, %s27_s0), 0  ;;  %p220_p3 = pnand %p2598_p0, %p219_p2 }
   0x6   : > { %p274_p4 = scmp.lt.s32.totalorder (!%p220_p3), %s3694_s17, 1  ;;  %v3755_v0 = vld [vmem:[%s4346_s1 + $0x10] sm:$0xff] (!%p220_p3)  ;;  %v3760_v1 = vld [vmem:[%s4346_s1] sm:$0xff] (!%p220_p3)  ;;  %v2604_v34 = vld [vmem:[%s4346_s1 + $0x18] sm:$0xff] (!%p220_p3)  ;;  %s3704_s10 = smov (!%p220_p3), 127   ;;  %vm770_vm0 = vcmask (!%p220_p3), 39936  }
   0x7   : > { %223 = sbr.rel (%p220_p3) target bundleno = 690 (0x2b2), region = 36  ;;  %v3764_v2 = vcombine.high (!%p220_p3), %v3755_v0, %v3755_v0  ;;  %v3768_v3 = vcombine.high (!%p220_p3), %v3760_v1, %v3760_v1  ;;  %v3855_v37 = vcombine.low (!%p220_p3), %v3755_v0, %v3755_v0  ;;  %v3859_v38 = vcombine.low (!%p220_p3), %v3760_v1, %v3760_v1  ;;  %v2602_v39 = vld [vmem:[%s4346_s1 + $0x8] sm:$0xff] (!%p220_p3)  ;;  %s3705_s11 = smov (!%p220_p3), 5  }
   0x8   : > { %v3866_v40 = vcombine.high (!%p220_p3), %v2604_v34, %v2604_v34  ;;  %v3869_v41 = vcombine.high (!%p220_p3), %v2602_v39, %v2602_v39  ;;  %v3890_v44 = vcombine.low (!%p220_p3), %v2604_v34, %v2604_v34  ;;  %v3895_v46 = vcombine.low (!%p220_p3), %v2602_v39, %v2602_v39  ;;  %s310_s12 = sld [smem:[#allocation2]] (!%p220_p3) }
   0x9   : > { %518 = vmatprep.mubr.bf16.mxu0 (!%p220_p3), %v3764_v2  ;;  %661 = vmatprep.mubr.bf16.mxu1 (!%p220_p3), %v3768_v3  ;;  %vm776_vm1 = vcmask (!%p220_p3), 40960  }
   0xe   : > { %s4355_s17 = smov (!%p274_p4, %s3694_s17), 1 }
   0xf   : > { %s3473_s24 = smul.u32 768, %s4355_s17  ;;  %s2601_s13 = sshll.u32 %s4355_s17, 3 }
  0x10   : > { %s4310_s16 = scalar_lea.vmem %s4349_s4, %s2601_s13 }
  0x11   : > { %s3780_s27 = scalar_lea.vmem %s4347_s2, %s3473_s24  ;;  %s3032_s6 = sadd.s32 640, %s3473_s24 }
  0x12   : > { %v3783_v4 = vld [vmem:[%s3780_s27 + $0xc0] sm:$0xff]   ;;  %v3798_v8 = vld [vmem:[%s3780_s27 + $0xc8] sm:$0xff]   ;;  %v3814_v12 = vld [vmem:[%s3780_s27 + $0xd0] sm:$0xff]   ;;  %s3989_s9 = scalar_lea.vmem %s4348_s3, %s3032_s6 }
  0x13   : > { %v3786_v5 = vld [vmem:[%s3780_s27 + $0x40] sm:$0xff]   ;;  %3033 = vmatprep.subr.bf16.mxu0 %v3783_v4  ;;  %v3802_v9 = vld [vmem:[%s3780_s27 + $0x48] sm:$0xff]   ;;  %v3818_v13 = vld [vmem:[%s3780_s27 + $0x50] sm:$0xff]  }
  0x14   : > { %v3790_v6 = vld [vmem:[%s3780_s27 + $0x80] sm:$0xff]   ;;  %3055 = vmatprep.subr.bf16.mxu1 %v3786_v5  ;;  %v3806_v10 = vld [vmem:[%s3780_s27 + $0x88] sm:$0xff]   ;;  %v3822_v14 = vld [vmem:[%s3780_s27 + $0x90] sm:$0xff]  }
  0x15   : > { %v3794_v7 = vld [vmem:[%s3780_s27] sm:$0xff]   ;;  %3034 = vmatpush3.bf16.msra.mxu0 %v3790_v6  ;;  %v3810_v11 = vld [vmem:[%s3780_s27 + $0x8] sm:$0xff]   ;;  %v3826_v15 = vld [vmem:[%s3780_s27 + $0x10] sm:$0xff]  }
  0x16   : > { %3056 = vmatpush3.bf16.msra.mxu1 %v3794_v7  ;;  %3035 = vmatprep.subr.bf16.mxu0 %v3798_v8  ;;  %v3514_v16 = vld [vmem:[%s3780_s27 + $0xd8] sm:$0xff]   ;;  %v3518_v20 = vld [vmem:[%s3780_s27 + $0xe0] sm:$0xff]   ;;  %v3522_v24 = vld [vmem:[%s3780_s27 + $0xe8] sm:$0xff]  }
  0x17   : > { %3057 = vmatprep.subr.bf16.mxu1 %v3802_v9  ;;  %v3515_v17 = vld [vmem:[%s3780_s27 + $0x58] sm:$0xff]   ;;  %v3519_v21 = vld [vmem:[%s3780_s27 + $0x60] sm:$0xff]   ;;  %v3523_v25 = vld [vmem:[%s3780_s27 + $0x68] sm:$0xff]  }
  0x18   : > { %v3516_v18 = vld [vmem:[%s3780_s27 + $0x98] sm:$0xff]   ;;  %v3520_v22 = vld [vmem:[%s3780_s27 + $0xa0] sm:$0xff]   ;;  %v3524_v26 = vld [vmem:[%s3780_s27 + $0xa8] sm:$0xff]  }
  0x19   : > { %3036 = vmatpush3.bf16.msra.mxu0 %v3806_v10  ;;  %v3517_v19 = vld [vmem:[%s3780_s27 + $0x18] sm:$0xff]   ;;  %v3521_v23 = vld [vmem:[%s3780_s27 + $0x20] sm:$0xff]   ;;  %v3525_v27 = vld [vmem:[%s3780_s27 + $0x28] sm:$0xff]  }
  0x1a   : > { %3058 = vmatpush3.bf16.msra.mxu1 %v3810_v11  ;;  %3037 = vmatprep.subr.bf16.mxu0 %v3814_v12  ;;  %v3526_v28 = vld [vmem:[%s3780_s27 + $0xf0] sm:$0xff]   ;;  %v3530_v32 = vld [vmem:[%s3780_s27 + $0xf8] sm:$0xff]   ;;  %v3885_v42 = vld [vmem:[%s3780_s27 + $0x140] sm:$0xff]  }
  0x1b   : > { %3059 = vmatprep.subr.bf16.mxu1 %v3818_v13  ;;  %v3527_v29 = vld [vmem:[%s3780_s27 + $0x70] sm:$0xff]   ;;  %v3531_v33 = vld [vmem:[%s3780_s27 + $0x78] sm:$0xff]   ;;  %v3888_v43 = vld [vmem:[%s3780_s27 + $0xc0] sm:$0xff]  }
  0x1c   : > { %v3528_v30 = vld [vmem:[%s3780_s27 + $0xb0] sm:$0xff]   ;;  %v3532_v35 = vld [vmem:[%s3780_s27 + $0xb8] sm:$0xff]   ;;  %v3893_v45 = vld [vmem:[%s3780_s27 + $0x100] sm:$0xff]  }
  0x1d   : > { %3038 = vmatpush3.bf16.msra.mxu0 %v3822_v14  ;;  %v3529_v31 = vld [vmem:[%s3780_s27 + $0x30] sm:$0xff]   ;;  %v3533_v36 = vld [vmem:[%s3780_s27 + $0x38] sm:$0xff]   ;;  %v3898_v47 = vld [vmem:[%s3780_s27 + $0x80] sm:$0xff]  }
  0x1e   : > { %3060 = vmatpush3.bf16.msra.mxu1 %v3826_v15  ;;  %3039 = vmatprep.subr.bf16.mxu0 %v3514_v16  ;;  %v3902_v48 = vld [vmem:[%s3780_s27 + $0x148] sm:$0xff]   ;;  %v3920_v52 = vld [vmem:[%s3780_s27 + $0x150] sm:$0xff]   ;;  %v3554_v56 = vld [vmem:[%s3780_s27 + $0x158] sm:$0xff]  }
  0x1f   : > { %3061 = vmatprep.subr.bf16.mxu1 %v3515_v17  ;;  %v3906_v49 = vld [vmem:[%s3780_s27 + $0xc8] sm:$0xff]   ;;  %v3924_v53 = vld [vmem:[%s3780_s27 + $0xd0] sm:$0xff]   ;;  %v3555_v57 = vld [vmem:[%s3780_s27 + $0xd8] sm:$0xff]  }
  0x20   : > { %v3910_v50 = vld [vmem:[%s3780_s27 + $0x108] sm:$0xff]   ;;  %v3552_v54 = vld [vmem:[%s3780_s27 + $0x110] sm:$0xff]   ;;  %v3556_v58 = vld [vmem:[%s3780_s27 + $0x118] sm:$0xff]  }
  0x21   : > { %3040 = vmatpush3.bf16.msra.mxu0 %v3516_v18  ;;  %v3915_v51 = vld [vmem:[%s3780_s27 + $0x88] sm:$0xff]   ;;  %v3553_v55 = vld [vmem:[%s3780_s27 + $0x90] sm:$0xff]   ;;  %v3557_v59 = vld [vmem:[%s3780_s27 + $0x98] sm:$0xff]  }
  0x22   : > { %3062 = vmatpush3.bf16.msra.mxu1 %v3517_v19  ;;  %3041 = vmatprep.subr.bf16.mxu0 %v3518_v20  ;;  %v3558_v60 = vld [vmem:[%s3780_s27 + $0x160] sm:$0xff]   ;;  %v3562_v0 = vld [vmem:[%s3780_s27 + $0x168] sm:$0xff]  }
  0x23   : > { %3063 = vmatprep.subr.bf16.mxu1 %v3519_v21  ;;  %v3559_v61 = vld [vmem:[%s3780_s27 + $0xe0] sm:$0xff]   ;;  %v3563_v1 = vld [vmem:[%s3780_s27 + $0xe8] sm:$0xff]  }
  0x24   : > { %v3560_v62 = vld [vmem:[%s3780_s27 + $0x120] sm:$0xff]   ;;  %v3594_v34 = vld [vmem:[%s3780_s27 + $0x1e8] sm:$0xff]  }
  0x25   : > { %3042 = vmatpush3.bf16.msra.mxu0 %v3520_v22  ;;  %v3561_v63 = vld [vmem:[%s3780_s27 + $0xa0] sm:$0xff]   ;;  %v3597_v39 = vld [vmem:[%s3780_s27 + $0x128] sm:$0xff]  }
  0x26   : > { %3064 = vmatpush3.bf16.msra.mxu1 %v3521_v23  ;;  %3043 = vmatprep.subr.bf16.mxu0 %v3522_v24 }
  0x27   : > { %3065 = vmatprep.subr.bf16.mxu1 %v3523_v25 }
  0x29   : > { %3044 = vmatpush3.bf16.msra.mxu0 %v3524_v26 }
  0x2a   : > { %3066 = vmatpush3.bf16.msra.mxu1 %v3525_v27  ;;  %3045 = vmatprep.subr.bf16.mxu0 %v3526_v28 }
  0x2b   : > { %3067 = vmatprep.subr.bf16.mxu1 %v3527_v29 }
  0x2d   : > { %3046 = vmatpush3.bf16.msra.mxu0 %v3528_v30 }
  0x2e   : > { %3068 = vmatpush3.bf16.msra.mxu1 %v3529_v31  ;;  %3047 = vmatprep.subr.bf16.mxu0 %v3530_v32 }
  0x2f   : > { %3069 = vmatprep.subr.bf16.mxu1 %v3531_v33 }
  0x31   : > { %3048 = vmatpush3.bf16.msra.mxu0 %v3532_v35 }
  0x32   : > { %3070 = vmatpush3.bf16.msra.mxu1 %v3533_v36  ;;  %3077 = vmatprep.subr.bf16.mxu0 %v3783_v4  ;;  %v3564_v4 = vld [vmem:[%s3780_s27 + $0x128] sm:$0xff]  }
  0x33   : > { %3099 = vmatprep.subr.bf16.mxu1 %v3786_v5  ;;  %v3565_v5 = vld [vmem:[%s3780_s27 + $0xa8] sm:$0xff]  }
  0x34   : > { %519 = vmatmul.mubr.bf16.vlgmr.msra.gmra.mrb[0].mxu0 %v3855_v37 }
  0x35   : > { %662 = vmatmul.mubr.bf16.vlgmr.msra.gmra.mrb[0].mxu1 %v3859_v38  ;;  %3078 = vmatpush3.bf16.msra.mxu0 %v3790_v6  ;;  %v3566_v6 = vld [vmem:[%s3780_s27 + $0x170] sm:$0xff]  }
  0x36   : > { %3100 = vmatpush3.bf16.msra.mxu1 %v3794_v7  ;;  %3079 = vmatprep.subr.bf16.mxu0 %v3798_v8  ;;  %v3567_v7 = vld [vmem:[%s3780_s27 + $0xf0] sm:$0xff]  }
  0x37   : > { %3101 = vmatprep.subr.bf16.mxu1 %v3802_v9  ;;  %708 = vmatprep.mubr.bf16.mxu0 %v3866_v40  ;;  %v3568_v8 = vld [vmem:[%s3780_s27 + $0x130] sm:$0xff]  }
  0x38   : > { %755 = vmatprep.mubr.bf16.mxu1 %v3869_v41  ;;  %v3569_v9 = vld [vmem:[%s3780_s27 + $0xb0] sm:$0xff]  }
  0x39   : > { %3080 = vmatpush3.bf16.msra.mxu0 %v3806_v10  ;;  %v3570_v10 = vld [vmem:[%s3780_s27 + $0x178] sm:$0xff]  }
  0x3a   : > { %3102 = vmatpush3.bf16.msra.mxu1 %v3810_v11  ;;  %3081 = vmatprep.subr.bf16.mxu0 %v3814_v12  ;;  %v3571_v11 = vld [vmem:[%s3780_s27 + $0xf8] sm:$0xff]  }
  0x3b   : > { %3103 = vmatprep.subr.bf16.mxu1 %v3818_v13  ;;  %v3572_v12 = vld [vmem:[%s3780_s27 + $0x138] sm:$0xff]  }
  0x3c   : > { %v3573_v13 = vld [vmem:[%s3780_s27 + $0xb8] sm:$0xff]  }
  0x3d   : > { %3082 = vmatpush3.bf16.msra.mxu0 %v3822_v14  ;;  %v3969_v14 = vld [vmem:[%s3780_s27 + $0x1c0] sm:$0xff]  }
  0x3e   : > { %3104 = vmatpush3.bf16.msra.mxu1 %v3826_v15  ;;  %3083 = vmatprep.subr.bf16.mxu0 %v3514_v16  ;;  %v3972_v15 = vld [vmem:[%s3780_s27 + $0x140] sm:$0xff]  }
  0x3f   : > { %3105 = vmatprep.subr.bf16.mxu1 %v3515_v17  ;;  %v3975_v16 = vld [vmem:[%s3780_s27 + $0x180] sm:$0xff]  }
  0x40   : > { %v3978_v17 = vld [vmem:[%s3780_s27 + $0x100] sm:$0xff]  }
  0x41   : > { %3084 = vmatpush3.bf16.msra.mxu0 %v3516_v18  ;;  %v3981_v18 = vld [vmem:[%s3780_s27 + $0x1c8] sm:$0xff]  }
  0x42   : > { %3106 = vmatpush3.bf16.msra.mxu1 %v3517_v19  ;;  %3085 = vmatprep.subr.bf16.mxu0 %v3518_v20  ;;  %v3993_v19 = vld [vmem:[%s3780_s27 + $0x148] sm:$0xff]  }
  0x43   : > { %3107 = vmatprep.subr.bf16.mxu1 %v3519_v21  ;;  %v3997_v20 = vld [vmem:[%s3780_s27 + $0x188] sm:$0xff]  }
  0x44   : > { %v4002_v21 = vld [vmem:[%s3780_s27 + $0x108] sm:$0xff]  }
  0x45   : > { %3086 = vmatpush3.bf16.msra.mxu0 %v3520_v22  ;;  %v4005_v22 = vld [vmem:[%s3780_s27 + $0x1d0] sm:$0xff]  }
  0x46   : > { %3108 = vmatpush3.bf16.msra.mxu1 %v3521_v23  ;;  %3087 = vmatprep.subr.bf16.mxu0 %v3522_v24  ;;  %v4010_v23 = vld [vmem:[%s3780_s27 + $0x150] sm:$0xff]  }
  0x47   : > { %3109 = vmatprep.subr.bf16.mxu1 %v3523_v25  ;;  %v4014_v24 = vld [vmem:[%s3780_s27 + $0x190] sm:$0xff]  }
  0x48   : > { %v3585_v25 = vld [vmem:[%s3780_s27 + $0x110] sm:$0xff]  }
  0x49   : > { %3088 = vmatpush3.bf16.msra.mxu0 %v3524_v26  ;;  %v3586_v26 = vld [vmem:[%s3780_s27 + $0x1d8] sm:$0xff]  }
  0x4a   : > { %3110 = vmatpush3.bf16.msra.mxu1 %v3525_v27  ;;  %3089 = vmatprep.subr.bf16.mxu0 %v3526_v28  ;;  %v3587_v27 = vld [vmem:[%s3780_s27 + $0x158] sm:$0xff]  }
  0x4b   : > { %3111 = vmatprep.subr.bf16.mxu1 %v3527_v29  ;;  %v3588_v28 = vld [vmem:[%s3780_s27 + $0x198] sm:$0xff]  }
  0x4c   : > { %v3589_v29 = vld [vmem:[%s3780_s27 + $0x118] sm:$0xff]  }
  0x4d   : > { %3090 = vmatpush3.bf16.msra.mxu0 %v3528_v30  ;;  %v3590_v30 = vld [vmem:[%s3780_s27 + $0x1e0] sm:$0xff]  }
  0x4e   : > { %3112 = vmatpush3.bf16.msra.mxu1 %v3529_v31  ;;  %3091 = vmatprep.subr.bf16.mxu0 %v3530_v32  ;;  %v3591_v31 = vld [vmem:[%s3780_s27 + $0x160] sm:$0xff]  }
  0x4f   : > { %3113 = vmatprep.subr.bf16.mxu1 %v3531_v33  ;;  %v3592_v32 = vld [vmem:[%s3780_s27 + $0x1a0] sm:$0xff]  }
  0x50   : > { %v3593_v33 = vld [vmem:[%s3780_s27 + $0x120] sm:$0xff]  }
  0x51   : > { %3092 = vmatpush3.bf16.msra.mxu0 %v3532_v35  ;;  %v3595_v35 = vld [vmem:[%s3780_s27 + $0x168] sm:$0xff]  }
  0x52   : > { %3114 = vmatpush3.bf16.msra.mxu1 %v3533_v36  ;;  %3121 = vmatprep.subr.bf16.mxu0 %v3885_v42  ;;  %v3596_v36 = vld [vmem:[%s3780_s27 + $0x1a8] sm:$0xff]  }
  0x53   : > { %3143 = vmatprep.subr.bf16.mxu1 %v3888_v43 }
  0x54   : > { %709 = vmatmul.mubr.bf16.vlgmr.msra.gmra.mrb[4].mxu0 %v3890_v44 }
  0x55   : > { %756 = vmatmul.mubr.bf16.vlgmr.msra.gmra.mrb[4].mxu1 %v3895_v46  ;;  %3122 = vmatpush3.bf16.msra.mxu0 %v3893_v45 }
  0x56   : > { %3144 = vmatpush3.bf16.msra.mxu1 %v3898_v47  ;;  %3123 = vmatprep.subr.bf16.mxu0 %v3902_v48 }
  0x57   : > { %3145 = vmatprep.subr.bf16.mxu1 %v3906_v49  ;;  %971 = vmatprep.mubr.bf16.mxu0 %v3764_v2 }
  0x58   : > { %1107 = vmatprep.mubr.bf16.mxu1 %v3768_v3 }
  0x59   : > { %3124 = vmatpush3.bf16.msra.mxu0 %v3910_v50 }
  0x5a   : > { %3146 = vmatpush3.bf16.msra.mxu1 %v3915_v51  ;;  %3125 = vmatprep.subr.bf16.mxu0 %v3920_v52 }
  0x5b   : > { %3147 = vmatprep.subr.bf16.mxu1 %v3924_v53 }
  0x5d   : > { %3126 = vmatpush3.bf16.msra.mxu0 %v3552_v54 }
  0x5e   : > { %3148 = vmatpush3.bf16.msra.mxu1 %v3553_v55  ;;  %3127 = vmatprep.subr.bf16.mxu0 %v3554_v56 }
  0x5f   : > { %3149 = vmatprep.subr.bf16.mxu1 %v3555_v57 }
  0x61   : > { %3128 = vmatpush3.bf16.msra.mxu0 %v3556_v58 }
  0x62   : > { %3150 = vmatpush3.bf16.msra.mxu1 %v3557_v59  ;;  %3129 = vmatprep.subr.bf16.mxu0 %v3558_v60 }
  0x63   : > { %3151 = vmatprep.subr.bf16.mxu1 %v3559_v61 }
  0x65   : > { %3130 = vmatpush3.bf16.msra.mxu0 %v3560_v62 }
  0x66   : > { %3152 = vmatpush3.bf16.msra.mxu1 %v3561_v63  ;;  %3131 = vmatprep.subr.bf16.mxu0 %v3562_v0 }
  0x67   : > { %3153 = vmatprep.subr.bf16.mxu1 %v3563_v1 }
  0x69   : > { %3132 = vmatpush3.bf16.msra.mxu0 %v3564_v4 }
  0x6a   : > { %3154 = vmatpush3.bf16.msra.mxu1 %v3565_v5  ;;  %3133 = vmatprep.subr.bf16.mxu0 %v3566_v6 }
  0x6b   : > { %3155 = vmatprep.subr.bf16.mxu1 %v3567_v7 }
  0x6d   : > { %3134 = vmatpush3.bf16.msra.mxu0 %v3568_v8 }
  0x6e   : > { %3156 = vmatpush3.bf16.msra.mxu1 %v3569_v9  ;;  %3135 = vmatprep.subr.bf16.mxu0 %v3570_v10 }
  0x6f   : > { %3157 = vmatprep.subr.bf16.mxu1 %v3571_v11 }
  0x71   : > { %3136 = vmatpush3.bf16.msra.mxu0 %v3572_v12 }
  0x72   : > { %3158 = vmatpush3.bf16.msra.mxu1 %v3573_v13  ;;  %3165 = vmatprep.subr.bf16.mxu0 %v3885_v42  ;;  %v3598_v42 = vld [vmem:[%s3780_s27 + $0x1f0] sm:$0xff]  }
  0x73   : > { %3187 = vmatprep.subr.bf16.mxu1 %v3888_v43  ;;  %v3599_v43 = vld [vmem:[%s3780_s27 + $0x170] sm:$0xff]  }
  0x74   : > { %972 = vmatmul.mubr.bf16.vlgmr.msra.gmra.mrb[8].mxu0 %v3855_v37 }
  0x75   : > { %1108 = vmatmul.mubr.bf16.vlgmr.msra.gmra.mrb[8].mxu1 %v3859_v38  ;;  %3166 = vmatpush3.bf16.msra.mxu0 %v3893_v45  ;;  %v3600_v45 = vld [vmem:[%s3780_s27 + $0x1b0] sm:$0xff]  }
  0x76   : > { %3188 = vmatpush3.bf16.msra.mxu1 %v3898_v47  ;;  %3167 = vmatprep.subr.bf16.mxu0 %v3902_v48  ;;  %v3601_v47 = vld [vmem:[%s3780_s27 + $0x130] sm:$0xff]   ;;  %v3602_v48 = vld [vmem:[%s3780_s27 + $0x1f8] sm:$0xff]  }
  0x77   : > { %3189 = vmatprep.subr.bf16.mxu1 %v3906_v49  ;;  %1147 = vmatprep.mubr.bf16.mxu0 %v3866_v40  ;;  %v3603_v49 = vld [vmem:[%s3780_s27 + $0x178] sm:$0xff]  }
  0x78   : > { %1187 = vmatprep.mubr.bf16.mxu1 %v3869_v41 }
  0x79   : > { %3168 = vmatpush3.bf16.msra.mxu0 %v3910_v50  ;;  %v3604_v50 = vld [vmem:[%s3780_s27 + $0x1b8] sm:$0xff]  }
  0x7a   : > { %3190 = vmatpush3.bf16.msra.mxu1 %v3915_v51  ;;  %3169 = vmatprep.subr.bf16.mxu0 %v3920_v52  ;;  %v3605_v51 = vld [vmem:[%s3780_s27 + $0x138] sm:$0xff]   ;;  %v4060_v52 = vld [vmem:[%s3780_s27 + $0x240] sm:$0xff]  }
  0x7b   : > { %3191 = vmatprep.subr.bf16.mxu1 %v3924_v53  ;;  %v4063_v53 = vld [vmem:[%s3780_s27 + $0x1c0] sm:$0xff]  }
  0x7d   : > { %3170 = vmatpush3.bf16.msra.mxu0 %v3552_v54  ;;  %v4066_v54 = vld [vmem:[%s3780_s27 + $0x200] sm:$0xff]  }
  0x7e   : > { %3192 = vmatpush3.bf16.msra.mxu1 %v3553_v55  ;;  %3171 = vmatprep.subr.bf16.mxu0 %v3554_v56  ;;  %v4070_v55 = vld [vmem:[%s3780_s27 + $0x180] sm:$0xff]   ;;  %v4073_v56 = vld [vmem:[%s3780_s27 + $0x248] sm:$0xff]  }
  0x7f   : > { %3193 = vmatprep.subr.bf16.mxu1 %v3555_v57  ;;  %v4077_v57 = vld [vmem:[%s3780_s27 + $0x1c8] sm:$0xff]  }
  0x81   : > { %3172 = vmatpush3.bf16.msra.mxu0 %v3556_v58  ;;  %v4083_v58 = vld [vmem:[%s3780_s27 + $0x208] sm:$0xff]  }
  0x82   : > { %3194 = vmatpush3.bf16.msra.mxu1 %v3557_v59  ;;  %3173 = vmatprep.subr.bf16.mxu0 %v3558_v60  ;;  %v4088_v59 = vld [vmem:[%s3780_s27 + $0x188] sm:$0xff]   ;;  %v4091_v60 = vld [vmem:[%s3780_s27 + $0x250] sm:$0xff]  }
  0x83   : > { %3195 = vmatprep.subr.bf16.mxu1 %v3559_v61  ;;  %v4095_v61 = vld [vmem:[%s3780_s27 + $0x1d0] sm:$0xff]  }
  0x85   : > { %3174 = vmatpush3.bf16.msra.mxu0 %v3560_v62  ;;  %v3616_v62 = vld [vmem:[%s3780_s27 + $0x210] sm:$0xff]  }
  0x86   : > { %3196 = vmatpush3.bf16.msra.mxu1 %v3561_v63  ;;  %3175 = vmatprep.subr.bf16.mxu0 %v3562_v0  ;;  %v3617_v63 = vld [vmem:[%s3780_s27 + $0x190] sm:$0xff]   ;;  %v3618_v0 = vld [vmem:[%s3780_s27 + $0x258] sm:$0xff]  }
  0x87   : > { %3197 = vmatprep.subr.bf16.mxu1 %v3563_v1  ;;  %v3619_v1 = vld [vmem:[%s3780_s27 + $0x1d8] sm:$0xff]  }
  0x89   : > { %3176 = vmatpush3.bf16.msra.mxu0 %v3564_v4  ;;  %v3620_v4 = vld [vmem:[%s3780_s27 + $0x218] sm:$0xff]  }
  0x8a   : > { %3198 = vmatpush3.bf16.msra.mxu1 %v3565_v5  ;;  %3177 = vmatprep.subr.bf16.mxu0 %v3566_v6  ;;  %v3621_v5 = vld [vmem:[%s3780_s27 + $0x198] sm:$0xff]   ;;  %v3622_v6 = vld [vmem:[%s3780_s27 + $0x260] sm:$0xff]  }
  0x8b   : > { %3199 = vmatprep.subr.bf16.mxu1 %v3567_v7  ;;  %v3623_v7 = vld [vmem:[%s3780_s27 + $0x1e0] sm:$0xff]  }
  0x8d   : > { %3178 = vmatpush3.bf16.msra.mxu0 %v3568_v8  ;;  %v3624_v8 = vld [vmem:[%s3780_s27 + $0x220] sm:$0xff]  }
  0x8e   : > { %3200 = vmatpush3.bf16.msra.mxu1 %v3569_v9  ;;  %3179 = vmatprep.subr.bf16.mxu0 %v3570_v10  ;;  %v3625_v9 = vld [vmem:[%s3780_s27 + $0x1a0] sm:$0xff]   ;;  %v3626_v10 = vld [vmem:[%s3780_s27 + $0x268] sm:$0xff]  }
  0x8f   : > { %3201 = vmatprep.subr.bf16.mxu1 %v3571_v11  ;;  %v3627_v11 = vld [vmem:[%s3780_s27 + $0x1e8] sm:$0xff]  }
  0x91   : > { %3180 = vmatpush3.bf16.msra.mxu0 %v3572_v12  ;;  %v3628_v12 = vld [vmem:[%s3780_s27 + $0x228] sm:$0xff]  }
  0x92   : > { %3202 = vmatpush3.bf16.msra.mxu1 %v3573_v13  ;;  %3209 = vmatprep.subr.bf16.mxu0 %v3969_v14  ;;  %v3629_v13 = vld [vmem:[%s3780_s27 + $0x1a8] sm:$0xff]  }
  0x93   : > { %3231 = vmatprep.subr.bf16.mxu1 %v3972_v15 }
  0x94   : > { %1148 = vmatmul.mubr.bf16.vlgmr.msra.gmra.mrb[12].mxu0 %v3890_v44 }
  0x95   : > { %1188 = vmatmul.mubr.bf16.vlgmr.msra.gmra.mrb[12].mxu1 %v3895_v46  ;;  %3210 = vmatpush3.bf16.msra.mxu0 %v3975_v16 }
  0x96   : > { %3232 = vmatpush3.bf16.msra.mxu1 %v3978_v17  ;;  %3211 = vmatprep.subr.bf16.mxu0 %v3981_v18 }
  0x97   : > { %3233 = vmatprep.subr.bf16.mxu1 %v3993_v19  ;;  %1400 = vmatprep.mubr.bf16.mxu0 %v3764_v2 }
  0x98   : > { %1536 = vmatprep.mubr.bf16.mxu1 %v3768_v3 }
  0x99   : > { %3212 = vmatpush3.bf16.msra.mxu0 %v3997_v20 }
  0x9a   : > { %3234 = vmatpush3.bf16.msra.mxu1 %v4002_v21  ;;  %3213 = vmatprep.subr.bf16.mxu0 %v4005_v22 }
  0x9b   : > { %3235 = vmatprep.subr.bf16.mxu1 %v4010_v23 }
  0x9d   : > { %3214 = vmatpush3.bf16.msra.mxu0 %v4014_v24 }
  0x9e   : > { %3236 = vmatpush3.bf16.msra.mxu1 %v3585_v25  ;;  %3215 = vmatprep.subr.bf16.mxu0 %v3586_v26 }
  0x9f   : > { %3237 = vmatprep.subr.bf16.mxu1 %v3587_v27 }
  0xa1   : > { %3216 = vmatpush3.bf16.msra.mxu0 %v3588_v28 }
  0xa2   : > { %3238 = vmatpush3.bf16.msra.mxu1 %v3589_v29  ;;  %3217 = vmatprep.subr.bf16.mxu0 %v3590_v30 }
  0xa3   : > { %3239 = vmatprep.subr.bf16.mxu1 %v3591_v31 }
  0xa5   : > { %3218 = vmatpush3.bf16.msra.mxu0 %v3592_v32 }
  0xa6   : > { %3240 = vmatpush3.bf16.msra.mxu1 %v3593_v33  ;;  %3219 = vmatprep.subr.bf16.mxu0 %v3594_v34 }
  0xa7   : > { %3241 = vmatprep.subr.bf16.mxu1 %v3595_v35 }
  0xa9   : > { %3220 = vmatpush3.bf16.msra.mxu0 %v3596_v36 }
  0xaa   : > { %3242 = vmatpush3.bf16.msra.mxu1 %v3597_v39  ;;  %3221 = vmatprep.subr.bf16.mxu0 %v3598_v42 }
  0xab   : > { %3243 = vmatprep.subr.bf16.mxu1 %v3599_v43 }
  0xad   : > { %3222 = vmatpush3.bf16.msra.mxu0 %v3600_v45 }
  0xae   : > { %3244 = vmatpush3.bf16.msra.mxu1 %v3601_v47  ;;  %3223 = vmatprep.subr.bf16.mxu0 %v3602_v48 }
  0xaf   : > { %3245 = vmatprep.subr.bf16.mxu1 %v3603_v49 }
  0xb1   : > { %3224 = vmatpush3.bf16.msra.mxu0 %v3604_v50 }
  0xb2   : > { %3246 = vmatpush3.bf16.msra.mxu1 %v3605_v51  ;;  %3253 = vmatprep.subr.bf16.mxu0 %v3969_v14  ;;  %v3630_v14 = vld [vmem:[%s3780_s27 + $0x270] sm:$0xff]  }
  0xb3   : > { %3275 = vmatprep.subr.bf16.mxu1 %v3972_v15  ;;  %v3631_v15 = vld [vmem:[%s3780_s27 + $0x1f0] sm:$0xff]  }
  0xb4   : > { %1401 = vmatmul.mubr.bf16.vlgmr.msra.gmra.mrb[16].mxu0 %v3855_v37 }
  0xb5   : > { %1537 = vmatmul.mubr.bf16.vlgmr.msra.gmra.mrb[16].mxu1 %v3859_v38  ;;  %3254 = vmatpush3.bf16.msra.mxu0 %v3975_v16  ;;  %v3632_v16 = vld [vmem:[%s3780_s27 + $0x230] sm:$0xff]  }
  0xb6   : > { %3276 = vmatpush3.bf16.msra.mxu1 %v3978_v17  ;;  %3255 = vmatprep.subr.bf16.mxu0 %v3981_v18  ;;  %v3633_v17 = vld [vmem:[%s3780_s27 + $0x1b0] sm:$0xff]   ;;  %v3634_v18 = vld [vmem:[%s3780_s27 + $0x278] sm:$0xff]  }
  0xb7   : > { %3277 = vmatprep.subr.bf16.mxu1 %v3993_v19  ;;  %1576 = vmatprep.mubr.bf16.mxu0 %v3866_v40  ;;  %v3635_v19 = vld [vmem:[%s3780_s27 + $0x1f8] sm:$0xff]  }
  0xb8   : > { %1616 = vmatprep.mubr.bf16.mxu1 %v3869_v41 }
  0xb9   : > { %3256 = vmatpush3.bf16.msra.mxu0 %v3997_v20  ;;  %v3636_v20 = vld [vmem:[%s3780_s27 + $0x238] sm:$0xff]  }
  0xba   : > { %3278 = vmatpush3.bf16.msra.mxu1 %v4002_v21  ;;  %3257 = vmatprep.subr.bf16.mxu0 %v4005_v22  ;;  %v3637_v21 = vld [vmem:[%s3780_s27 + $0x1b8] sm:$0xff]  }
  0xbb   : > { %3279 = vmatprep.subr.bf16.mxu1 %v4010_v23 }
  0xbd   : > { %3258 = vmatpush3.bf16.msra.mxu0 %v4014_v24 }
  0xbe   : > { %3280 = vmatpush3.bf16.msra.mxu1 %v3585_v25  ;;  %3259 = vmatprep.subr.bf16.mxu0 %v3586_v26 }
  0xbf   : > { %3281 = vmatprep.subr.bf16.mxu1 %v3587_v27 }
  0xc1   : > { %3260 = vmatpush3.bf16.msra.mxu0 %v3588_v28 }
  0xc2   : > { %3282 = vmatpush3.bf16.msra.mxu1 %v3589_v29  ;;  %3261 = vmatprep.subr.bf16.mxu0 %v3590_v30 }
  0xc3   : > { %3283 = vmatprep.subr.bf16.mxu1 %v3591_v31 }
  0xc5   : > { %3262 = vmatpush3.bf16.msra.mxu0 %v3592_v32 }
  0xc6   : > { %3284 = vmatpush3.bf16.msra.mxu1 %v3593_v33  ;;  %3263 = vmatprep.subr.bf16.mxu0 %v3594_v34  ;;  %v4142_v33 = vld [vmem:[%s3989_s9 + $0x40] sm:$0xff]  }
  0xc7   : > { %3285 = vmatprep.subr.bf16.mxu1 %v3595_v35  ;;  %v4145_v34 = vld [vmem:[%s3780_s27 + $0x240] sm:$0xff]  }
  0xc8   : > { %v4148_v35 = vld [vmem:[%s3989_s9] sm:$0xff]  }
  0xc9   : > { %3264 = vmatpush3.bf16.msra.mxu0 %v3596_v36  ;;  %v4152_v36 = vld [vmem:[%s3780_s27 + $0x200] sm:$0xff]  }
  0xca   : > { %3286 = vmatpush3.bf16.msra.mxu1 %v3597_v39  ;;  %3265 = vmatprep.subr.bf16.mxu0 %v3598_v42  ;;  %v4155_v39 = vld [vmem:[%s3989_s9 + $0x48] sm:$0xff]  }
  0xcb   : > { %3287 = vmatprep.subr.bf16.mxu1 %v3599_v43  ;;  %v4159_v42 = vld [vmem:[%s3780_s27 + $0x248] sm:$0xff]  }
  0xcc   : > { %v4165_v43 = vld [vmem:[%s3989_s9 + $0x8] sm:$0xff]  }
  0xcd   : > { %3266 = vmatpush3.bf16.msra.mxu0 %v3600_v45  ;;  %v4170_v45 = vld [vmem:[%s3780_s27 + $0x208] sm:$0xff]  }
  0xce   : > { %3288 = vmatpush3.bf16.msra.mxu1 %v3601_v47  ;;  %3267 = vmatprep.subr.bf16.mxu0 %v3602_v48  ;;  %v4173_v47 = vld [vmem:[%s3989_s9 + $0x50] sm:$0xff]  }
  0xcf   : > { %3289 = vmatprep.subr.bf16.mxu1 %v3603_v49  ;;  %v4177_v48 = vld [vmem:[%s3780_s27 + $0x250] sm:$0xff]  }
  0xd0   : > { %v4183_v49 = vld [vmem:[%s3989_s9 + $0x10] sm:$0xff]  }
  0xd1   : > { %3268 = vmatpush3.bf16.msra.mxu0 %v3604_v50  ;;  %v4188_v50 = vld [vmem:[%s3780_s27 + $0x210] sm:$0xff]  }
  0xd2   : > { %3290 = vmatpush3.bf16.msra.mxu1 %v3605_v51  ;;  %3297 = vmatprep.subr.bf16.mxu0 %v4060_v52  ;;  %v4191_v51 = vld [vmem:[%s3989_s9 + $0x58] sm:$0xff]  }
  0xd3   : > { %3319 = vmatprep.subr.bf16.mxu1 %v4063_v53 }
  0xd4   : > { %1577 = vmatmul.mubr.bf16.vlgmr.msra.gmra.mrb[20].mxu0 %v3890_v44 }
  0xd5   : > { %1617 = vmatmul.mubr.bf16.vlgmr.msra.gmra.mrb[20].mxu1 %v3895_v46  ;;  %3298 = vmatpush3.bf16.msra.mxu0 %v4066_v54 }
  0xd6   : > { %3320 = vmatpush3.bf16.msra.mxu1 %v4070_v55  ;;  %3299 = vmatprep.subr.bf16.mxu0 %v4073_v56 }
  0xd7   : > { %3321 = vmatprep.subr.bf16.mxu1 %v4077_v57  ;;  %1829 = vmatprep.mubr.bf16.mxu0 %v3764_v2 }
  0xd8   : > { %1965 = vmatprep.mubr.bf16.mxu1 %v3768_v3 }
  0xd9   : > { %3300 = vmatpush3.bf16.msra.mxu0 %v4083_v58 }
  0xda   : > { %3322 = vmatpush3.bf16.msra.mxu1 %v4088_v59  ;;  %3301 = vmatprep.subr.bf16.mxu0 %v4091_v60 }
  0xdb   : > { %3323 = vmatprep.subr.bf16.mxu1 %v4095_v61 }
  0xdd   : > { %3302 = vmatpush3.bf16.msra.mxu0 %v3616_v62 }
  0xde   : > { %3324 = vmatpush3.bf16.msra.mxu1 %v3617_v63  ;;  %3303 = vmatprep.subr.bf16.mxu0 %v3618_v0 }
  0xdf   : > { %3325 = vmatprep.subr.bf16.mxu1 %v3619_v1 }
  0xe1   : > { %3304 = vmatpush3.bf16.msra.mxu0 %v3620_v4 }
  0xe2   : > { %3326 = vmatpush3.bf16.msra.mxu1 %v3621_v5  ;;  %3305 = vmatprep.subr.bf16.mxu0 %v3622_v6 }
  0xe3   : > { %3327 = vmatprep.subr.bf16.mxu1 %v3623_v7 }
  0xe5   : > { %3306 = vmatpush3.bf16.msra.mxu0 %v3624_v8 }
  0xe6   : > { %3328 = vmatpush3.bf16.msra.mxu1 %v3625_v9  ;;  %3307 = vmatprep.subr.bf16.mxu0 %v3626_v10 }
  0xe7   : > { %3329 = vmatprep.subr.bf16.mxu1 %v3627_v11 }
  0xe9   : > { %3308 = vmatpush3.bf16.msra.mxu0 %v3628_v12 }
  0xea   : > { %3330 = vmatpush3.bf16.msra.mxu1 %v3629_v13  ;;  %3309 = vmatprep.subr.bf16.mxu0 %v3630_v14 }
  0xeb   : > { %3331 = vmatprep.subr.bf16.mxu1 %v3631_v15 }
  0xed   : > { %3310 = vmatpush3.bf16.msra.mxu0 %v3632_v16 }
  0xee   : > { %3332 = vmatpush3.bf16.msra.mxu1 %v3633_v17  ;;  %3311 = vmatprep.subr.bf16.mxu0 %v3634_v18 }
  0xef   : > { %3333 = vmatprep.subr.bf16.mxu1 %v3635_v19 }
  0xf1   : > { %3312 = vmatpush3.bf16.msra.mxu0 %v3636_v20 }
  0xf2   : > { %3334 = vmatpush3.bf16.msra.mxu1 %v3637_v21  ;;  %3341 = vmatprep.subr.bf16.mxu0 %v4060_v52  ;;  %v4204_v52 = vld [vmem:[%s3780_s27 + $0x218] sm:$0xff]  }
  0xf3   : > { %3363 = vmatprep.subr.bf16.mxu1 %v4063_v53  ;;  %v4207_v53 = vld [vmem:[%s3989_s9 + $0x60] sm:$0xff]  }
  0xf4   : > { %1830 = vmatmul.mubr.bf16.vlgmr.msra.gmra.mrb[24].mxu0 %v3855_v37 }
  0xf5   : > { %1966 = vmatmul.mubr.bf16.vlgmr.msra.gmra.mrb[24].mxu1 %v3859_v38  ;;  %3342 = vmatpush3.bf16.msra.mxu0 %v4066_v54  ;;  %v4211_v54 = vld [vmem:[%s3780_s27 + $0x260] sm:$0xff]  }
  0xf6   : > { %3364 = vmatpush3.bf16.msra.mxu1 %v4070_v55  ;;  %3343 = vmatprep.subr.bf16.mxu0 %v4073_v56  ;;  %v4215_v55 = vld [vmem:[%s3989_s9 + $0x20] sm:$0xff]  }
  0xf7   : > { %3365 = vmatprep.subr.bf16.mxu1 %v4077_v57  ;;  %2005 = vmatprep.mubr.bf16.mxu0 %v3866_v40  ;;  %v4220_v56 = vld [vmem:[%s3780_s27 + $0x220] sm:$0xff]   ;;  %v4223_v57 = vld [vmem:[%s3989_s9 + $0x68] sm:$0xff]  }
  0xf8   : > { %2045 = vmatprep.mubr.bf16.mxu1 %v3869_v41 }
  0xf9   : > { %3344 = vmatpush3.bf16.msra.mxu0 %v4083_v58  ;;  %v4227_v58 = vld [vmem:[%s3780_s27 + $0x268] sm:$0xff]  }
  0xfa   : > { %3366 = vmatpush3.bf16.msra.mxu1 %v4088_v59  ;;  %3345 = vmatprep.subr.bf16.mxu0 %v4091_v60  ;;  %v4231_v59 = vld [vmem:[%s3989_s9 + $0x28] sm:$0xff]  }
  0xfb   : > { %3367 = vmatprep.subr.bf16.mxu1 %v4095_v61  ;;  %v4236_v60 = vld [vmem:[%s3780_s27 + $0x228] sm:$0xff]   ;;  %v4239_v61 = vld [vmem:[%s3989_s9 + $0x70] sm:$0xff]  }
  0xfd   : > { %3346 = vmatpush3.bf16.msra.mxu0 %v3616_v62 }
  0xfe   : > { %3368 = vmatpush3.bf16.msra.mxu1 %v3617_v63  ;;  %3347 = vmatprep.subr.bf16.mxu0 %v3618_v0  ;;  %v4243_v63 = vld [vmem:[%s3780_s27 + $0x270] sm:$0xff]  }
  0xff   : > { %3369 = vmatprep.subr.bf16.mxu1 %v3619_v1 }
 0x101   : > { %3348 = vmatpush3.bf16.msra.mxu0 %v3620_v4 }
 0x102   : > { %3370 = vmatpush3.bf16.msra.mxu1 %v3621_v5  ;;  %3349 = vmatprep.subr.bf16.mxu0 %v3622_v6 }
 0x103   : > { %3371 = vmatprep.subr.bf16.mxu1 %v3623_v7  ;;  %v4247_v7 = vld [vmem:[%s3989_s9 + $0x30] sm:$0xff]  }
 0x105   : > { %3350 = vmatpush3.bf16.msra.mxu0 %v3624_v8 }
 0x106   : > { %3372 = vmatpush3.bf16.msra.mxu1 %v3625_v9  ;;  %3351 = vmatprep.subr.bf16.mxu0 %v3626_v10 }
 0x107   : > { %v3049_v22 = vpop.f32.mrb[0].mxu0  ;;  %3373 = vmatprep.subr.bf16.mxu1 %v3627_v11  ;;  %v3665_v11 = vld [vmem:[%s3780_s27 + $0x230] sm:$0xff]  }
 0x108   : > { %v3071_v23 = vpop.f32.mrb[0].mxu1  ;;  %v3050_v24 = vpop.f32.mrb[1].mxu0 }
 0x109   : > { %v3051_v25 = vadd.f32 %v3050_v24, %v3049_v22  ;;  %v3072_v26 = vpop.f32.mrb[1].mxu1  ;;  %v3052_v27 = vpop.f32.mrb[2].mxu0  ;;  %3352 = vmatpush3.bf16.msra.mxu0 %v3628_v12 }
 0x10a   : > { %v3073_v28 = vadd.f32 %v3072_v26, %v3071_v23  ;;  %v3074_v29 = vpop.f32.mrb[2].mxu1  ;;  %3374 = vmatpush3.bf16.msra.mxu1 %v3629_v13  ;;  %v3053_v30 = vpop.f32.mrb[3].mxu0  ;;  %3353 = vmatprep.subr.bf16.mxu0 %v3630_v14  ;;  %v3666_v13 = vld [vmem:[%s3989_s9 + $0x78] sm:$0xff]  }
 0x10b   : > { %v3075_v31 = vpop.f32.mrb[3].mxu1  ;;  %3375 = vmatprep.subr.bf16.mxu1 %v3631_v15  ;;  %v3667_v14 = vld [vmem:[%s3780_s27 + $0x278] sm:$0xff]  }
 0x10c   : > { %v4139_v32 = vadd.f32 %v3073_v28, %v3051_v25 }
 0x10d   : > { %3354 = vmatpush3.bf16.msra.mxu0 %v3632_v16  ;;  %v3668_v16 = vld [vmem:[%s3989_s9 + $0x38] sm:$0xff]  }
 0x10e   : > { %3376 = vmatpush3.bf16.msra.mxu1 %v3633_v17  ;;  %3355 = vmatprep.subr.bf16.mxu0 %v3634_v18  ;;  %v3669_v17 = vld [vmem:[%s3780_s27 + $0x238] sm:$0xff]  }
 0x10f   : > { %3377 = vmatprep.subr.bf16.mxu1 %v3635_v19 }
 0x111   : > { %3356 = vmatpush3.bf16.msra.mxu0 %v3636_v20 }
 0x112   : > { %3378 = vmatpush3.bf16.msra.mxu1 %v3637_v21  ;;  %3385 = vmatprep.subr.bf16.mxu0 %v4142_v33 }
 0x113   : > { %3407 = vmatprep.subr.bf16.mxu1 %v4145_v34 }
 0x114   : > { %2006 = vmatmul.mubr.bf16.vlgmr.msra.gmra.mrb[28].mxu0 %v3890_v44 }
 0x115   : > { %2046 = vmatmul.mubr.bf16.vlgmr.msra.gmra.mrb[28].mxu1 %v3895_v46  ;;  %3386 = vmatpush3.bf16.msra.mxu0 %v4148_v35 }
 0x116   : > { %3408 = vmatpush3.bf16.msra.mxu1 %v4152_v36  ;;  %3387 = vmatprep.subr.bf16.mxu0 %v4155_v39 }
 0x117   : > { %3409 = vmatprep.subr.bf16.mxu1 %v4159_v42  ;;  %2257 = vmatprep.mubr.bf16.mxu0 %v3764_v2  ;;  %v4195_v2 = vld [vmem:[%s3780_s27 + $0x258] sm:$0xff]  }
 0x118   : > { %2393 = vmatprep.mubr.bf16.mxu1 %v3768_v3  ;;  %v4199_v3 = vld [vmem:[%s3989_s9 + $0x18] sm:$0xff]  }
 0x119   : > { %3388 = vmatpush3.bf16.msra.mxu0 %v4165_v43 }
 0x11a   : > { %3410 = vmatpush3.bf16.msra.mxu1 %v4170_v45  ;;  %3389 = vmatprep.subr.bf16.mxu0 %v4173_v47 }
 0x11b   : > { %3411 = vmatprep.subr.bf16.mxu1 %v4177_v48 }
 0x11d   : > { %3390 = vmatpush3.bf16.msra.mxu0 %v4183_v49 }
 0x11e   : > { %3412 = vmatpush3.bf16.msra.mxu1 %v4188_v50  ;;  %3391 = vmatprep.subr.bf16.mxu0 %v4191_v51 }
 0x11f   : > { %3413 = vmatprep.subr.bf16.mxu1 %v4195_v2 }
 0x121   : > { %3392 = vmatpush3.bf16.msra.mxu0 %v4199_v3 }
 0x122   : > { %3414 = vmatpush3.bf16.msra.mxu1 %v4204_v52  ;;  %3393 = vmatprep.subr.bf16.mxu0 %v4207_v53 }
 0x123   : > { %3415 = vmatprep.subr.bf16.mxu1 %v4211_v54 }
 0x125   : > { %3394 = vmatpush3.bf16.msra.mxu0 %v4215_v55 }
 0x126   : > { %3416 = vmatpush3.bf16.msra.mxu1 %v4220_v56  ;;  %3395 = vmatprep.subr.bf16.mxu0 %v4223_v57 }
 0x127   : > { %v3093_v62 = vpop.f32.mrb[4].mxu0  ;;  %3417 = vmatprep.subr.bf16.mxu1 %v4227_v58 }
 0x128   : > { %v3115_v0 = vpop.f32.mrb[4].mxu1  ;;  %v3094_v1 = vpop.f32.mrb[5].mxu0 }
 0x129   : > { %v3095_v4 = vadd.f32 %v3094_v1, %v3093_v62  ;;  %v3116_v5 = vpop.f32.mrb[5].mxu1  ;;  %v3096_v6 = vpop.f32.mrb[6].mxu0  ;;  %3396 = vmatpush3.bf16.msra.mxu0 %v4231_v59 }
 0x12a   : > { %v3117_v8 = vadd.f32 %v3116_v5, %v3115_v0  ;;  %v3118_v9 = vpop.f32.mrb[6].mxu1  ;;  %3418 = vmatpush3.bf16.msra.mxu1 %v4236_v60  ;;  %v3097_v10 = vpop.f32.mrb[7].mxu0  ;;  %3397 = vmatprep.subr.bf16.mxu0 %v4239_v61 }
 0x12b   : > { %v3119_v12 = vpop.f32.mrb[7].mxu1  ;;  %3419 = vmatprep.subr.bf16.mxu1 %v4243_v63 }
 0x12c   : > { %v758_v15 = vadd.f32 %v3117_v8, %v3095_v4 }
 0x12d   : > { %3398 = vmatpush3.bf16.msra.mxu0 %v4247_v7 }
 0x12e   : > { %3420 = vmatpush3.bf16.msra.mxu1 %v3665_v11  ;;  %764 = vrot.lane.b32.xlu0 %v758_v15, %s3704_s10 }
 0x12f   : > { %3399 = vmatprep.subr.bf16.mxu0 %v3666_v13  ;;  %3421 = vmatprep.subr.bf16.mxu1 %v3667_v14 }
 0x131   : > { %3400 = vmatpush3.bf16.msra.mxu0 %v3668_v16 }
 0x132   : > { %3422 = vmatpush3.bf16.msra.mxu1 %v3669_v17  ;;  %767 = vrot.lane.b32.xlu0 %v758_v15, %s3705_s11 }
 0x133   : > { %3429 = vmatprep.subr.bf16.mxu0 %v4142_v33  ;;  %3451 = vmatprep.subr.bf16.mxu1 %v4145_v34 }
 0x134   : > { %2258 = vmatmul.mubr.bf16.vlgmr.msra.gmra.mrb[32].mxu0 %v3855_v37 }
 0x135   : > { %2394 = vmatmul.mubr.bf16.vlgmr.msra.gmra.mrb[32].mxu1 %v3859_v38  ;;  %3430 = vmatpush3.bf16.msra.mxu0 %v4148_v35 }
 0x136   : > { %3452 = vmatpush3.bf16.msra.mxu1 %v4152_v36  ;;  %3431 = vmatprep.subr.bf16.mxu0 %v4155_v39 }
 0x137   : > { %3453 = vmatprep.subr.bf16.mxu1 %v4159_v42  ;;  %2433 = vmatprep.mubr.bf16.mxu0 %v3866_v40 }
 0x138   : > { %2473 = vmatprep.mubr.bf16.mxu1 %v3869_v41 }
 0x139   : > { %3432 = vmatpush3.bf16.msra.mxu0 %v4165_v43 }
 0x13a   : > { %3454 = vmatpush3.bf16.msra.mxu1 %v4170_v45  ;;  %3433 = vmatprep.subr.bf16.mxu0 %v4173_v47 }
 0x13b   : > { %3455 = vmatprep.subr.bf16.mxu1 %v4177_v48 }
 0x13d   : > { %3434 = vmatpush3.bf16.msra.mxu0 %v4183_v49 }
 0x13e   : > { %3456 = vmatpush3.bf16.msra.mxu1 %v4188_v50  ;;  %3435 = vmatprep.subr.bf16.mxu0 %v4191_v51 }
 0x13f   : > { %3457 = vmatprep.subr.bf16.mxu1 %v4195_v2 }
 0x141   : > { %3436 = vmatpush3.bf16.msra.mxu0 %v4199_v3 }
 0x142   : > { %3458 = vmatpush3.bf16.msra.mxu1 %v4204_v52  ;;  %3437 = vmatprep.subr.bf16.mxu0 %v4207_v53  ;;  %v4299_v52 = vstv %s310_s12 }
 0x143   : > { %3459 = vmatprep.subr.bf16.mxu1 %v4211_v54 }
 0x145   : > { %3438 = vmatpush3.bf16.msra.mxu0 %v4215_v55 }
 0x146   : > { %3460 = vmatpush3.bf16.msra.mxu1 %v4220_v56  ;;  %3439 = vmatprep.subr.bf16.mxu0 %v4223_v57 }
 0x147   : > { %v3137_v37 = vpop.f32.mrb[8].mxu0  ;;  %3461 = vmatprep.subr.bf16.mxu1 %v4227_v58 }
 0x148   : > { %v3159_v38 = vpop.f32.mrb[8].mxu1  ;;  %v3138_v40 = vpop.f32.mrb[9].mxu0 }
 0x149   : > { %v3139_v41 = vadd.f32 %v3138_v40, %v3137_v37  ;;  %v3160_v18 = vpop.f32.mrb[9].mxu1  ;;  %v3140_v19 = vpop.f32.mrb[10].mxu0  ;;  %3440 = vmatpush3.bf16.msra.mxu0 %v4231_v59 }
 0x14a   : > { %v3161_v20 = vadd.f32 %v3160_v18, %v3159_v38  ;;  %v3162_v21 = vpop.f32.mrb[10].mxu1  ;;  %3462 = vmatpush3.bf16.msra.mxu1 %v4236_v60  ;;  %v3141_v22 = vpop.f32.mrb[11].mxu0  ;;  %3441 = vmatprep.subr.bf16.mxu0 %v4239_v61 }
 0x14b   : > { %v3163_v23 = vpop.f32.mrb[11].mxu1  ;;  %3463 = vmatprep.subr.bf16.mxu1 %v4243_v63 }
 0x14c   : > { %v4290_v24 = vadd.f32 %v3161_v20, %v3139_v41 }
 0x14d   : > { %3442 = vmatpush3.bf16.msra.mxu0 %v4247_v7 }
 0x14e   : > { %3464 = vmatpush3.bf16.msra.mxu1 %v3665_v11  ;;  %3443 = vmatprep.subr.bf16.mxu0 %v3666_v13 }
 0x14f   : > { %3465 = vmatprep.subr.bf16.mxu1 %v3667_v14 }
 0x151   : > { %3444 = vmatpush3.bf16.msra.mxu0 %v3668_v16 }
 0x152   : > { %3466 = vmatpush3.bf16.msra.mxu1 %v3669_v17 }
 0x154   : > { %2434 = vmatmul.mubr.bf16.vlgmr.msra.gmra.mrb[36].mxu0 %v3890_v44 }
 0x155   : > { %2474 = vmatmul.mubr.bf16.vlgmr.msra.gmra.mrb[36].mxu1 %v3895_v46 }
 0x167   : > { %v3181_v25 = vpop.f32.mrb[12].mxu0 }
 0x168   : > { %v3203_v26 = vpop.f32.mrb[12].mxu1  ;;  %v3182_v27 = vpop.f32.mrb[13].mxu0 }
 0x169   : > { %v3183_v28 = vadd.f32 %v3182_v27, %v3181_v25  ;;  %v3204_v29 = vpop.f32.mrb[13].mxu1  ;;  %v3184_v30 = vpop.f32.mrb[14].mxu0 }
 0x16a   : > { %v3205_v31 = vadd.f32 %v3204_v29, %v3203_v26  ;;  %v3206_v33 = vpop.f32.mrb[14].mxu1  ;;  %v3185_v34 = vpop.f32.mrb[15].mxu0 }
 0x16b   : > { %v3207_v35 = vpop.f32.mrb[15].mxu1 }
 0x16c   : > { %v1190_v36 = vadd.f32 %v3205_v31, %v3183_v28 }
 0x16e   : > { %1196 = vrot.lane.b32.xlu1 %v1190_v36, %s3704_s10 }
 0x172   : > { %1199 = vrot.lane.b32.xlu1 %v1190_v36, %s3705_s11 }
 0x187   : > { %v3225_v39 = vpop.f32.mrb[16].mxu0 }
 0x188   : > { %v3247_v42 = vpop.f32.mrb[16].mxu1  ;;  %v3226_v44 = vpop.f32.mrb[17].mxu0 }
 0x189   : > { %v3227_v43 = vadd.f32 %v3226_v44, %v3225_v39  ;;  %v3248_v46 = vpop.f32.mrb[17].mxu1  ;;  %v3228_v45 = vpop.f32.mrb[18].mxu0 }
 0x18a   : > { %v3249_v47 = vadd.f32 %v3248_v46, %v3247_v42  ;;  %v3250_v48 = vpop.f32.mrb[18].mxu1  ;;  %v3229_v49 = vpop.f32.mrb[19].mxu0 }
 0x18b   : > { %v3251_v50 = vpop.f32.mrb[19].mxu1 }
 0x18c   : > { %v4297_v51 = vadd.f32 %v3249_v47, %v3227_v43 }
 0x1a0   : > { %v765_v2 = vpop.permute.xlu0 %764 }
 0x1a4   : > { %v768_v3 = vpop.permute.xlu0 %767 }
 0x1a5   : > { %v771_v53 = vsel %vm770_vm0, %v765_v2, %v768_v3 }
 0x1a6   : > { %v772_v54 = vadd.f32 %v771_v53, %v4139_v32 }
 0x1a7   : > { %v3269_v55 = vpop.f32.mrb[20].mxu0 }
 0x1a8   : > { %v774_v56 = vadd.f32 %v4299_v52, %v772_v54  ;;  %v3291_v57 = vpop.f32.mrb[20].mxu1  ;;  %v3270_v58 = vpop.f32.mrb[21].mxu0 }
 0x1a9   : > { %v3271_v59 = vadd.f32 %v3270_v58, %v3269_v55  ;;  %v3292_v60 = vpop.f32.mrb[21].mxu1  ;;  %v3272_v61 = vpop.f32.mrb[22].mxu0 }
 0x1aa   : > { %3670 = vtanh.f32 %v774_v56  ;;  %v3293_v62 = vadd.f32 %v3292_v60, %v3291_v57  ;;  %v3294_v63 = vpop.f32.mrb[22].mxu1  ;;  %v3273_v0 = vpop.f32.mrb[23].mxu0 }
 0x1ab   : > { %v3295_v1 = vpop.f32.mrb[23].mxu1 }
 0x1ac   : > { %v1619_v4 = vadd.f32 %v3293_v62, %v3271_v59 }
 0x1ae   : > { %1628 = vrot.lane.b32.xlu1 %v1619_v4, %s3705_s11  ;;  %1625 = vrot.lane.b32.xlu0 %v1619_v4, %s3704_s10 }
 0x1b4   : > { %v3671_v32 = vpop.eup %3670 }
 0x1b5   : > { %777 = vst.msk [vmem:[%s4310_s16] sm:$0x1] %vm776_vm1, %v3671_v32 }
 0x1c7   : > { %v3313_v5 = vpop.f32.mrb[24].mxu0 }
 0x1c8   : > { %v3335_v6 = vpop.f32.mrb[24].mxu1  ;;  %v3314_v7 = vpop.f32.mrb[25].mxu0 }
 0x1c9   : > { %v3315_v8 = vadd.f32 %v3314_v7, %v3313_v5  ;;  %v3336_v9 = vpop.f32.mrb[25].mxu1  ;;  %v3316_v10 = vpop.f32.mrb[26].mxu0 }
 0x1ca   : > { %v3337_v11 = vadd.f32 %v3336_v9, %v3335_v6  ;;  %v3338_v12 = vpop.f32.mrb[26].mxu1  ;;  %v3317_v13 = vpop.f32.mrb[27].mxu0 }
 0x1cb   : > { %v3339_v14 = vpop.f32.mrb[27].mxu1 }
 0x1cc   : > { %v1968_v15 = vadd.f32 %v3337_v11, %v3315_v8 }
 0x1e0   : > { %v1197_v16 = vpop.permute.xlu1 %1196 }
 0x1e4   : > { %v1200_v17 = vpop.permute.xlu1 %1199 }
 0x1e5   : > { %v1202_v37 = vsel %vm770_vm0, %v1197_v16, %v1200_v17 }
 0x1e6   : > { %v1203_v38 = vadd.f32 %v1202_v37, %v4290_v24 }
 0x1e7   : > { %v3357_v40 = vpop.f32.mrb[28].mxu0 }
 0x1e8   : > { %v1204_v41 = vadd.f32 %v1203_v38, %v4299_v52  ;;  %v3379_v18 = vpop.f32.mrb[28].mxu1  ;;  %v3358_v19 = vpop.f32.mrb[29].mxu0 }
 0x1e9   : > { %v3359_v20 = vadd.f32 %v3358_v19, %v3357_v40  ;;  %v3380_v21 = vpop.f32.mrb[29].mxu1  ;;  %v3360_v22 = vpop.f32.mrb[30].mxu0 }
 0x1ea   : > { %3672 = vtanh.f32 %v1204_v41  ;;  %v3381_v23 = vadd.f32 %v3380_v21, %v3379_v18  ;;  %v3382_v25 = vpop.f32.mrb[30].mxu1  ;;  %v3361_v26 = vpop.f32.mrb[31].mxu0 }
 0x1eb   : > { %v3383_v27 = vpop.f32.mrb[31].mxu1 }
 0x1ec   : > { %v2048_v28 = vadd.f32 %v3381_v23, %v3359_v20 }
 0x1ee   : > { %2057 = vrot.lane.b32.xlu1 %v2048_v28, %s3705_s11  ;;  %2054 = vrot.lane.b32.xlu0 %v2048_v28, %s3704_s10 }
 0x1f4   : > { %v3673_v24 = vpop.eup %3672 }
 0x1f5   : > { %1206 = vst.msk [vmem:[%s4310_s16 + $0x1] sm:$0x1] %vm776_vm1, %v3673_v24 }
 0x207   : > { %v3401_v29 = vpop.f32.mrb[32].mxu0 }
 0x208   : > { %v3423_v30 = vpop.f32.mrb[32].mxu1  ;;  %v3402_v31 = vpop.f32.mrb[33].mxu0 }
 0x209   : > { %v3403_v33 = vadd.f32 %v3402_v31, %v3401_v29  ;;  %v3424_v34 = vpop.f32.mrb[33].mxu1  ;;  %v3404_v35 = vpop.f32.mrb[34].mxu0 }
 0x20a   : > { %v3425_v36 = vadd.f32 %v3424_v34, %v3423_v30  ;;  %v3426_v39 = vpop.f32.mrb[34].mxu1  ;;  %v3405_v42 = vpop.f32.mrb[35].mxu0 }
 0x20b   : > { %v3427_v44 = vpop.f32.mrb[35].mxu1 }
 0x20c   : > { %v2396_v43 = vadd.f32 %v3425_v36, %v3403_v33 }
 0x220   : > { %v1629_v46 = vpop.permute.xlu1 %1628  ;;  %v1626_v45 = vpop.permute.xlu0 %1625 }
 0x221   : > { %v1631_v47 = vsel %vm770_vm0, %v1626_v45, %v1629_v46 }
 0x222   : > { %v1632_v48 = vadd.f32 %v1631_v47, %v4297_v51 }
 0x224   : > { %v1633_v49 = vadd.f32 %v1632_v48, %v4299_v52 }
 0x226   : > { %3674 = vtanh.f32 %v1633_v49 }
 0x227   : > { %v3445_v50 = vpop.f32.mrb[36].mxu0 }
 0x228   : > { %v3467_v2 = vpop.f32.mrb[36].mxu1  ;;  %v3446_v3 = vpop.f32.mrb[37].mxu0 }
 0x229   : > { %v3447_v53 = vadd.f32 %v3446_v3, %v3445_v50  ;;  %v3468_v54 = vpop.f32.mrb[37].mxu1  ;;  %v3448_v55 = vpop.f32.mrb[38].mxu0 }
 0x22a   : > { %v3469_v56 = vadd.f32 %v3468_v54, %v3467_v2  ;;  %v3470_v57 = vpop.f32.mrb[38].mxu1  ;;  %v3449_v58 = vpop.f32.mrb[39].mxu0 }
 0x22b   : > { %v3471_v59 = vpop.f32.mrb[39].mxu1 }
 0x22c   : > { %v2476_v60 = vadd.f32 %v3469_v56, %v3447_v53 }
 0x22e   : > { %2485 = vrot.lane.b32.xlu1 %v2476_v60, %s3705_s11  ;;  %2482 = vrot.lane.b32.xlu0 %v2476_v60, %s3704_s10 }
 0x230   : > { %v3675_v51 = vpop.eup %3674 }
 0x231   : > { %1635 = vst.msk [vmem:[%s4310_s16 + $0x2] sm:$0x1] %vm776_vm1, %v3675_v51 }
 0x260   : > { %v2058_v61 = vpop.permute.xlu1 %2057  ;;  %v2055_v62 = vpop.permute.xlu0 %2054 }
 0x261   : > { %v2060_v63 = vsel %vm770_vm0, %v2055_v62, %v2058_v61 }
 0x262   : > { %v2061_v0 = vadd.f32 %v2060_v63, %v1968_v15 }
 0x264   : > { %v2062_v1 = vadd.f32 %v2061_v0, %v4299_v52 }
 0x266   : > { %3676 = vtanh.f32 %v2062_v1 }
 0x270   : > { %v3677_v4 = vpop.eup %3676 }
 0x271   : > { %2064 = vst.msk [vmem:[%s4310_s16 + $0x3] sm:$0x1] %vm776_vm1, %v3677_v4 }
 0x2a0   : > { %v2486_v32 = vpop.permute.xlu1 %2485  ;;  %v2483_v5 = vpop.permute.xlu0 %2482 }
 0x2a1   : > { %v2488_v6 = vsel %vm770_vm0, %v2483_v5, %v2486_v32 }
 0x2a2   : > { %v2489_v7 = vadd.f32 %v2488_v6, %v2396_v43 }
 0x2a4   : > { %v2490_v8 = vadd.f32 %v2489_v7, %v4299_v52 }
 0x2a6   : > { %3678 = vtanh.f32 %v2490_v8 }
 0x2b0   : > { %v3679_v9 = vpop.eup %3678 }
 0x2b1   : > { %2492 = vst.msk [vmem:[%s4310_s16 + $0x4] sm:$0x1] %vm776_vm1, %v3679_v9 }
 0x2b2 PF: > { %s15_s19 = sadd.s32 1, %s3702_s19   ;;  %s4350_s17 = smov %s3698_s18 }
 0x2b3   : > { %p12_p5 = scmp.ge.s32.totalorder %s15_s19, 4   ;;  %s4351_s18 = smov %s4353_s0 }
 0x2b5   :  { %14 = sbr.rel (!%p12_p5) target bundleno = 2 (0x2), region = 76 }

</bundles_post_ra>
